<compile_context>
chip_gen: v7x
topology: tpu7x:2x2x1
jax: 0.10.0
libtpu: 0.0.40
codegen_flags: <defaults>
</compile_context>

<pallas_src>
import math

import jax
import jax.numpy as jnp
from jax.experimental import pallas as pl
from jax.experimental.pallas import tpu as pltpu

# ----------------------------- model hyper-params ---------------------------
NTOKEN = 50
NINP = 32          # d_model
NHEAD = 2
NHID = 64          # dim_feedforward
NLAYERS = 2
SEQ = 8
BATCH = 2
HEAD_DIM = NINP // NHEAD
N = SEQ * BATCH    # rows of the activation slab, (seq, batch) row order
VPAD = 128         # decoder output padded to a full 128-lane tile
LN_EPS = 1e-5
NEG_BIG = -1e30    # finite additive mask (numerically == -inf after softmax)

# --------------------- bf16 weight-slab layout (rows x 128) ------------------
W_QKV = 0                          # (NINP, 3*NINP) in lanes 0:96, Q pre-scaled
W_O = NINP                         # (NINP, NINP)   in lanes 0:32
W_FF1 = 2 * NINP                   # (NINP, NHID)   in lanes 0:64
W_FF2 = 3 * NINP                   # (NHID, NINP)   in lanes 0:32
LAYER_W_ROWS = 3 * NINP + NHID     # 160 rows / layer (8-aligned)
W_DEC = NLAYERS * LAYER_W_ROWS     # decoder weight (NINP, VPAD), vocab in 0:50
W_ROWS = W_DEC + NINP              # 352

# ----------------------- f32 misc-slab layout (rows x 128) -------------------
EMB_ROWS = 64                      # NTOKEN padded to a sublane multiple
F_EMB = 0                          # emb table * sqrt(NINP), lanes 0:32
F_PE = EMB_ROWS                    # pos-enc expanded per (seq,batch) row, lanes 0:32
F_BIAS = F_PE + N                  # per-layer bias / LN block (8 rows each)
B_QKV, B_O, B_FF1, B_FF2, B_LN1W, B_LN1B, B_LN2W, B_LN2B = range(8)
LAYER_F_ROWS = 8
F_DECB = F_BIAS + NLAYERS * LAYER_F_ROWS
F_ROWS = F_DECB + 1                # 97


# ----------------------------- in-kernel helpers ----------------------------
def _layer_norm(x, w, b):
    mu = jnp.mean(x, axis=-1, keepdims=True)
    xc = x - mu
    var = jnp.mean(xc * xc, axis=-1, keepdims=True)
    return xc * jax.lax.rsqrt(var + LN_EPS) * w + b


def _gelu_exact(x):
    # nn.GELU() default == exact erf-based GELU
    return 0.5 * x * (1.0 + jax.lax.erf(x * (1.0 / math.sqrt(2.0))))


# --------------------- fused full-forward Pallas kernel ----------------------
def fused_forward_kernel(ids_ref, w_ref, f_ref, o_ref):
    # ---- embedding lookup (exact one-hot f32 matmul, table pre-scaled) + pos-enc
    ids = ids_ref[...]                                              # (N, 1) int32
    tok = jax.lax.broadcasted_iota(jnp.int32, (N, EMB_ROWS), 1)
    onehot = (ids == tok).astype(jnp.float32)                       # (N, 64)
    emb = f_ref[F_EMB:F_EMB + EMB_ROWS, :]                          # (64, 128)
    x = (jnp.dot(onehot, emb, preferred_element_type=jnp.float32)
         + f_ref[F_PE:F_PE + N, :])[:, :NINP]                       # (N, 32) f32

    # ---- causal + same-sequence additive mask, built ONCE (hoisted) ----------
    r = jax.lax.broadcasted_iota(jnp.int32, (N, N), 0)
    c = jax.lax.broadcasted_iota(jnp.int32, (N, N), 1)
    if BATCH & (BATCH - 1) == 0:                                    # power-of-two batch
        same_seq = (r & (BATCH - 1)) == (c & (BATCH - 1))
    else:
        same_seq = (r % BATCH) == (c % BATCH)
    allowed = same_seq & (c <= r)
    mask_bias = jnp.where(allowed, 0.0, NEG_BIG).astype(jnp.float32)  # (N, N)

    for l in range(NLAYERS):                                        # static unroll
        wb = l * LAYER_W_ROWS
        fb = F_BIAS + l * LAYER_F_ROWS

        # ---- fused Q|K|V projection: ONE lane-dense (N,32)x(32,128) matmul ----
        qkv = (jnp.dot(x.astype(jnp.bfloat16),
                       w_ref[wb + W_QKV:wb + W_QKV + NINP, :],
                       preferred_element_type=jnp.float32)
               + f_ref[fb + B_QKV:fb + B_QKV + 1, :])               # (N, 128)

        # ---- per-head attention (head h = lane slice h*hd:(h+1)*hd) -----------
        ctx_heads = []
        for h in range(NHEAD):
            q_h = qkv[:, h * HEAD_DIM:(h + 1) * HEAD_DIM].astype(jnp.bfloat16)
            k_h = qkv[:, NINP + h * HEAD_DIM:NINP + (h + 1) * HEAD_DIM].astype(jnp.bfloat16)
            v_h = qkv[:, 2 * NINP + h * HEAD_DIM:2 * NINP + (h + 1) * HEAD_DIM].astype(jnp.bfloat16)
            s = jax.lax.dot_general(q_h, k_h, (((1,), (1,)), ((), ())),
                                    preferred_element_type=jnp.float32)   # (N, N)
            s = s + mask_bias
            m = jnp.max(s, axis=-1, keepdims=True)
            e = jnp.exp(s - m)
            p = e / jnp.sum(e, axis=-1, keepdims=True)               # exact softmax
            ctx_heads.append(jnp.dot(p.astype(jnp.bfloat16), v_h,
                                     preferred_element_type=jnp.float32))  # (N, hd)
        ctx = jnp.concatenate(ctx_heads, axis=-1)                    # (N, 32)

        # ---- single fused output projection -----------------------------------
        attn = (jnp.dot(ctx.astype(jnp.bfloat16),
                        w_ref[wb + W_O:wb + W_O + NINP, :],
                        preferred_element_type=jnp.float32)
                + f_ref[fb + B_O:fb + B_O + 1, :])[:, :NINP]

        # ---- residual + layernorm 1 -------------------------------------------
        x = _layer_norm(x + attn,
                        f_ref[fb + B_LN1W:fb + B_LN1W + 1, :NINP],
                        f_ref[fb + B_LN1B:fb + B_LN1B + 1, :NINP])

        # ---- feed-forward ------------------------------------------------------
        h1 = (jnp.dot(x.astype(jnp.bfloat16),
                      w_ref[wb + W_FF1:wb + W_FF1 + NINP, :],
                      preferred_element_type=jnp.float32)
              + f_ref[fb + B_FF1:fb + B_FF1 + 1, :])[:, :NHID]
        h1 = _gelu_exact(h1)
        h2 = (jnp.dot(h1.astype(jnp.bfloat16),
                      w_ref[wb + W_FF2:wb + W_FF2 + NHID, :],
                      preferred_element_type=jnp.float32)
              + f_ref[fb + B_FF2:fb + B_FF2 + 1, :])[:, :NINP]

        # ---- residual + layernorm 2 -------------------------------------------
        x = _layer_norm(x + h2,
                        f_ref[fb + B_LN2W:fb + B_LN2W + 1, :NINP],
                        f_ref[fb + B_LN2B:fb + B_LN2B + 1, :NINP])

    # ---- decoder projection: lane-dense (N, 128) store --------------------------
    o_ref[...] = (jnp.dot(x.astype(jnp.bfloat16), w_ref[W_DEC:W_DEC + NINP, :],
                          preferred_element_type=jnp.float32)
                  + f_ref[F_DECB:F_DECB + 1, :])


def fused_forward(ids_flat, prep):
    """ids_flat: (SEQ*BATCH, 1) int32 in (seq, batch) row order -> (SEQ*BATCH, VPAD) f32."""
    return pl.pallas_call(
        fused_forward_kernel,
        out_shape=jax.ShapeDtypeStruct((N, VPAD), jnp.float32),
        in_specs=[pl.BlockSpec(memory_space=pltpu.MemorySpace.VMEM),
                  pl.BlockSpec(memory_space=pltpu.MemorySpace.VMEM),
                  pl.BlockSpec(memory_space=pltpu.MemorySpace.VMEM)],
        out_specs=pl.BlockSpec(memory_space=pltpu.MemorySpace.VMEM),
    )(ids_flat, prep["w_bf16"], prep["f32"])


# ----------------------------- parameter construction ------------------------
def init_params(key):
    """Parameters in the PyTorch module's layout (weights stored (in, out))."""
    params = {"layers": []}
    key, k_emb, k_dec = jax.random.split(key, 3)
    initrange = 0.1
    params["emb_w"] = jax.random.uniform(k_emb, (NTOKEN, NINP), jnp.float32,
                                         -initrange, initrange)
    params["dec_w"] = jax.random.uniform(k_dec, (NINP, NTOKEN), jnp.float32,
                                         -initrange, initrange)
    params["dec_b"] = jnp.zeros((NTOKEN,), jnp.float32)

    for _ in range(NLAYERS):
        key, k1, k2, k3, k4 = jax.random.split(key, 5)
        xav = math.sqrt(6.0 / (NINP + 3 * NINP))     # xavier_uniform bound for qkv_net
        lin_o = 1.0 / math.sqrt(NINP)
        lin_1 = 1.0 / math.sqrt(NINP)
        lin_2 = 1.0 / math.sqrt(NHID)
        params["layers"].append({
            "qkv_w": jax.random.uniform(k1, (NINP, 3 * NINP), jnp.float32, -xav, xav),
            "qkv_b": jnp.zeros((3 * NINP,), jnp.float32),
            "o_w": jax.random.uniform(k2, (NINP, NINP), jnp.float32, -lin_o, lin_o),
            "o_b": jnp.zeros((NINP,), jnp.float32),
            "ln1_w": jnp.ones((NINP,), jnp.float32),
            "ln1_b": jnp.zeros((NINP,), jnp.float32),
            "ln2_w": jnp.ones((NINP,), jnp.float32),
            "ln2_b": jnp.zeros((NINP,), jnp.float32),
            "ff1_w": jax.random.uniform(k3, (NINP, NHID), jnp.float32, -lin_1, lin_1),
            "ff1_b": jnp.zeros((NHID,), jnp.float32),
            "ff2_w": jax.random.uniform(k4, (NHID, NINP), jnp.float32, -lin_2, lin_2),
            "ff2_b": jnp.zeros((NINP,), jnp.float32),
        })
    return params


def positional_encoding(seq_len, d_model, max_len=64):
    position = jnp.arange(max_len, dtype=jnp.float32)[:, None]
    div_term = jnp.exp(jnp.arange(0, d_model, 2, dtype=jnp.float32)
                       * (-math.log(10000.0) / d_model))
    pe = jnp.zeros((max_len, d_model), jnp.float32)
    pe = pe.at[:, 0::2].set(jnp.sin(position * div_term))
    pe = pe.at[:, 1::2].set(jnp.cos(position * div_term))
    return pe[:seq_len]                                        # (S, D)


def prepare_params(params):
    """One-time repack of torch-layout params into two VMEM-resident slabs."""
    scale = float(HEAD_DIM) ** -0.5

    w_slab = jnp.zeros((W_ROWS, VPAD), jnp.float32)
    f_slab = jnp.zeros((F_ROWS, VPAD), jnp.float32)

    # embedding table pre-scaled by sqrt(ninp); pos-enc expanded to (seq,batch) rows
    f_slab = f_slab.at[F_EMB:F_EMB + NTOKEN, :NINP].set(params["emb_w"] * math.sqrt(NINP))
    pe_rows = jnp.repeat(positional_encoding(SEQ, NINP), BATCH, axis=0)   # (N, NINP)
    f_slab = f_slab.at[F_PE:F_PE + N, :NINP].set(pe_rows)

    for l, p in enumerate(params["layers"]):
        wb = l * LAYER_W_ROWS
        fb = F_BIAS + l * LAYER_F_ROWS
        # head_dim**-0.5 folded into the Q columns / Q bias
        qkv_w = p["qkv_w"].at[:, :NINP].multiply(scale)
        qkv_b = p["qkv_b"].at[:NINP].multiply(scale)
        w_slab = w_slab.at[wb + W_QKV:wb + W_QKV + NINP, :3 * NINP].set(qkv_w)
        w_slab = w_slab.at[wb + W_O:wb + W_O + NINP, :NINP].set(p["o_w"])
        w_slab = w_slab.at[wb + W_FF1:wb + W_FF1 + NINP, :NHID].set(p["ff1_w"])
        w_slab = w_slab.at[wb + W_FF2:wb + W_FF2 + NHID, :NINP].set(p["ff2_w"])
        f_slab = f_slab.at[fb + B_QKV, :3 * NINP].set(qkv_b)
        f_slab = f_slab.at[fb + B_O, :NINP].set(p["o_b"])
        f_slab = f_slab.at[fb + B_FF1, :NHID].set(p["ff1_b"])
        f_slab = f_slab.at[fb + B_FF2, :NINP].set(p["ff2_b"])
        f_slab = f_slab.at[fb + B_LN1W, :NINP].set(p["ln1_w"])
        f_slab = f_slab.at[fb + B_LN1B, :NINP].set(p["ln1_b"])
        f_slab = f_slab.at[fb + B_LN2W, :NINP].set(p["ln2_w"])
        f_slab = f_slab.at[fb + B_LN2B, :NINP].set(p["ln2_b"])

    # decoder weight/bias (vocab lane-padded to 128 for a lane-dense output store)
    w_slab = w_slab.at[W_DEC:W_DEC + NINP, :NTOKEN].set(params["dec_w"])
    f_slab = f_slab.at[F_DECB, :NTOKEN].set(params["dec_b"])

    return {"w_bf16": w_slab.astype(jnp.bfloat16), "f32": f_slab}


# ----------------------------- full forward ---------------------------------
def transformer_forward(src_tokens, prep):
    """src_tokens: (S, B) int32 token ids -> (S, B, NTOKEN) float32 logits."""
    S, B = src_tokens.shape
    ids = src_tokens.reshape(S * B, 1).astype(jnp.int32)      # (seq, batch) row order
    logits = fused_forward(ids, prep)                          # (S*B, VPAD)
    return logits.reshape(S, B, VPAD)[:, :, :NTOKEN]           # (S, B, NTOKEN)


# --------------------------------- main --------------------------------------
if __name__ == "__main__":
    key = jax.random.PRNGKey(0)
    k_params, k_tokens = jax.random.split(key)

    params = init_params(k_params)
    prep = prepare_params(params)
    src = jax.random.randint(k_tokens, (SEQ, BATCH), 0, NTOKEN, dtype=jnp.int32)

    out = jax.jit(transformer_forward)(src, prep)
    jax.block_until_ready(out)
    assert out.shape == (SEQ, BATCH, NTOKEN)
    assert bool(jnp.all(jnp.isfinite(out)))
    print("KERNEL_OK")
</pallas_src>

<mosaic_0001>
module attributes {stable_mosaic.version = 11 : i64} {
  func.func @fused_forward_kernel(%arg0: memref<16x1xi32, #tpu.memory_space<vmem>>, %arg1: memref<352x128xbf16, #tpu.memory_space<vmem>>, %arg2: memref<97x128xf32, #tpu.memory_space<vmem>>, %arg3: memref<16x128xf32, #tpu.memory_space<vmem>>) attributes {dimension_semantics = [], scalar_prefetch = 0 : i64, scratch_operands = 0 : i64, tpu.core_type = #tpu.core_type<tc>} {
    %c0 = arith.constant 0 : index
    %c0_0 = arith.constant 0 : index
    %0 = vector.load %arg0[%c0, %c0_0] : memref<16x1xi32, #tpu.memory_space<vmem>>, vector<16x1xi32>
    %1 = tpu.iota {dimensions = array<i32: 1>} : vector<16x64xi32>
    %2 = vector.broadcast %0 : vector<16x1xi32> to vector<16x64xi32>
    %3 = arith.cmpi eq, %2, %1 : vector<16x64xi32>
    %4 = arith.extui %3 : vector<16x64xi1> to vector<16x64xi32>
    %5 = arith.sitofp %4 : vector<16x64xi32> to vector<16x64xf32>
    %c0_1 = arith.constant 0 : index
    %c0_2 = arith.constant 0 : index
    %6 = vector.load %arg2[%c0_1, %c0_2] : memref<97x128xf32, #tpu.memory_space<vmem>>, vector<64x128xf32>
    %cst = arith.constant dense<0.000000e+00> : vector<16x128xf32>
    %7 = tpu.matmul %5, %6, %cst {dimension_numbers = #tpu.dot_dimension_numbers<[1], [0], [0], [1], [0, 0, 1, 1], [], []>} : vector<16x64xf32>, vector<64x128xf32>, vector<16x128xf32> -> vector<16x128xf32>
    %c64 = arith.constant 64 : index
    %c0_3 = arith.constant 0 : index
    %8 = vector.load %arg2[%c64, %c0_3] : memref<97x128xf32, #tpu.memory_space<vmem>>, vector<16x128xf32>
    %9 = arith.addf %7, %8 : vector<16x128xf32>
    %10 = vector.extract_strided_slice %9 {offsets = [0, 0], sizes = [16, 32], strides = [1, 1]} : vector<16x128xf32> to vector<16x32xf32>
    %11 = tpu.iota {dimensions = array<i32: 0>} : vector<16x16xi32>
    %12 = tpu.iota {dimensions = array<i32: 1>} : vector<16x16xi32>
    %c1_i32 = arith.constant 1 : i32
    %13 = vector.broadcast %c1_i32 : i32 to vector<16x16xi32>
    %14 = arith.andi %11, %13 : vector<16x16xi32>
    %c1_i32_4 = arith.constant 1 : i32
    %15 = vector.broadcast %c1_i32_4 : i32 to vector<16x16xi32>
    %16 = arith.andi %12, %15 : vector<16x16xi32>
    %17 = arith.cmpi eq, %14, %16 : vector<16x16xi32>
    %18 = arith.cmpi sle, %12, %11 : vector<16x16xi32>
    %19 = arith.andi %17, %18 : vector<16x16xi1>
    %cst_5 = arith.constant 0.000000e+00 : f32
    %cst_6 = arith.constant -1.000000e+30 : f32
    %20 = vector.broadcast %cst_5 : f32 to vector<16x16xf32>
    %21 = vector.broadcast %cst_6 : f32 to vector<16x16xf32>
    %22 = arith.select %19, %20, %21 : vector<16x16xi1>, vector<16x16xf32>
    %23 = arith.truncf %10 : vector<16x32xf32> to vector<16x32xbf16>
    %c0_7 = arith.constant 0 : index
    %c0_8 = arith.constant 0 : index
    %24 = vector.load %arg1[%c0_7, %c0_8] : memref<352x128xbf16, #tpu.memory_space<vmem>>, vector<32x128xbf16>
    %cst_9 = arith.constant dense<0.000000e+00> : vector<16x128xf32>
    %25 = tpu.matmul %23, %24, %cst_9 {dimension_numbers = #tpu.dot_dimension_numbers<[1], [0], [0], [1], [0, 0, 1, 1], [], []>} : vector<16x32xbf16>, vector<32x128xbf16>, vector<16x128xf32> -> vector<16x128xf32>
    %c80 = arith.constant 80 : index
    %c0_10 = arith.constant 0 : index
    %26 = vector.load %arg2[%c80, %c0_10] : memref<97x128xf32, #tpu.memory_space<vmem>>, vector<1x128xf32>
    %27 = vector.broadcast %26 : vector<1x128xf32> to vector<16x128xf32>
    %28 = arith.addf %25, %27 : vector<16x128xf32>
    %29 = vector.extract_strided_slice %28 {offsets = [0, 0], sizes = [16, 16], strides = [1, 1]} : vector<16x128xf32> to vector<16x16xf32>
    %30 = arith.truncf %29 : vector<16x16xf32> to vector<16x16xbf16>
    %31 = vector.extract_strided_slice %28 {offsets = [0, 32], sizes = [16, 16], strides = [1, 1]} : vector<16x128xf32> to vector<16x16xf32>
    %32 = arith.truncf %31 : vector<16x16xf32> to vector<16x16xbf16>
    %33 = vector.extract_strided_slice %28 {offsets = [0, 64], sizes = [16, 16], strides = [1, 1]} : vector<16x128xf32> to vector<16x16xf32>
    %34 = arith.truncf %33 : vector<16x16xf32> to vector<16x16xbf16>
    %cst_11 = arith.constant dense<0.000000e+00> : vector<16x16xf32>
    %35 = tpu.matmul %30, %32, %cst_11 {dimension_numbers = #tpu.dot_dimension_numbers<[1], [1], [0], [0], [0, 0, 1, 0], [], []>} : vector<16x16xbf16>, vector<16x16xbf16>, vector<16x16xf32> -> vector<16x16xf32>
    %36 = arith.addf %35, %22 : vector<16x16xf32>
    %cst_12 = arith.constant dense<0xFF800000> : vector<16xf32>
    %37 = vector.multi_reduction <maximumf>, %36, %cst_12 [1] : vector<16x16xf32> to vector<16xf32>
    %38 = vector.shape_cast %37 : vector<16xf32> to vector<16x1xf32>
    %39 = vector.broadcast %38 : vector<16x1xf32> to vector<16x16xf32>
    %40 = arith.subf %36, %39 : vector<16x16xf32>
    %41 = math.exp %40 : vector<16x16xf32>
    %cst_13 = arith.constant dense<0.000000e+00> : vector<16xf32>
    %42 = vector.multi_reduction <add>, %41, %cst_13 [1] : vector<16x16xf32> to vector<16xf32>
    %43 = vector.shape_cast %42 : vector<16xf32> to vector<16x1xf32>
    %44 = vector.broadcast %43 : vector<16x1xf32> to vector<16x16xf32>
    %45 = arith.divf %41, %44 : vector<16x16xf32>
    %46 = arith.truncf %45 : vector<16x16xf32> to vector<16x16xbf16>
    %cst_14 = arith.constant dense<0.000000e+00> : vector<16x16xf32>
    %47 = tpu.matmul %46, %34, %cst_14 {dimension_numbers = #tpu.dot_dimension_numbers<[1], [0], [0], [1], [0, 0, 1, 1], [], []>} : vector<16x16xbf16>, vector<16x16xbf16>, vector<16x16xf32> -> vector<16x16xf32>
    %48 = vector.extract_strided_slice %28 {offsets = [0, 16], sizes = [16, 16], strides = [1, 1]} : vector<16x128xf32> to vector<16x16xf32>
    %49 = arith.truncf %48 : vector<16x16xf32> to vector<16x16xbf16>
    %50 = vector.extract_strided_slice %28 {offsets = [0, 48], sizes = [16, 16], strides = [1, 1]} : vector<16x128xf32> to vector<16x16xf32>
    %51 = arith.truncf %50 : vector<16x16xf32> to vector<16x16xbf16>
    %52 = vector.extract_strided_slice %28 {offsets = [0, 80], sizes = [16, 16], strides = [1, 1]} : vector<16x128xf32> to vector<16x16xf32>
    %53 = arith.truncf %52 : vector<16x16xf32> to vector<16x16xbf16>
    %cst_15 = arith.constant dense<0.000000e+00> : vector<16x16xf32>
    %54 = tpu.matmul %49, %51, %cst_15 {dimension_numbers = #tpu.dot_dimension_numbers<[1], [1], [0], [0], [0, 0, 1, 0], [], []>} : vector<16x16xbf16>, vector<16x16xbf16>, vector<16x16xf32> -> vector<16x16xf32>
    %55 = arith.addf %54, %22 : vector<16x16xf32>
    %cst_16 = arith.constant dense<0xFF800000> : vector<16xf32>
    %56 = vector.multi_reduction <maximumf>, %55, %cst_16 [1] : vector<16x16xf32> to vector<16xf32>
    %57 = vector.shape_cast %56 : vector<16xf32> to vector<16x1xf32>
    %58 = vector.broadcast %57 : vector<16x1xf32> to vector<16x16xf32>
    %59 = arith.subf %55, %58 : vector<16x16xf32>
    %60 = math.exp %59 : vector<16x16xf32>
    %cst_17 = arith.constant dense<0.000000e+00> : vector<16xf32>
    %61 = vector.multi_reduction <add>, %60, %cst_17 [1] : vector<16x16xf32> to vector<16xf32>
    %62 = vector.shape_cast %61 : vector<16xf32> to vector<16x1xf32>
    %63 = vector.broadcast %62 : vector<16x1xf32> to vector<16x16xf32>
    %64 = arith.divf %60, %63 : vector<16x16xf32>
    %65 = arith.truncf %64 : vector<16x16xf32> to vector<16x16xbf16>
    %cst_18 = arith.constant dense<0.000000e+00> : vector<16x16xf32>
    %66 = tpu.matmul %65, %53, %cst_18 {dimension_numbers = #tpu.dot_dimension_numbers<[1], [0], [0], [1], [0, 0, 1, 1], [], []>} : vector<16x16xbf16>, vector<16x16xbf16>, vector<16x16xf32> -> vector<16x16xf32>
    %67 = tpu.concatenate %47, %66 in 1 : vector<16x16xf32>, vector<16x16xf32> -> vector<16x32xf32>
    %68 = arith.truncf %67 : vector<16x32xf32> to vector<16x32xbf16>
    %c32 = arith.constant 32 : index
    %c0_19 = arith.constant 0 : index
    %69 = vector.load %arg1[%c32, %c0_19] : memref<352x128xbf16, #tpu.memory_space<vmem>>, vector<32x128xbf16>
    %cst_20 = arith.constant dense<0.000000e+00> : vector<16x128xf32>
    %70 = tpu.matmul %68, %69, %cst_20 {dimension_numbers = #tpu.dot_dimension_numbers<[1], [0], [0], [1], [0, 0, 1, 1], [], []>} : vector<16x32xbf16>, vector<32x128xbf16>, vector<16x128xf32> -> vector<16x128xf32>
    %c81 = arith.constant 81 : index
    %c0_21 = arith.constant 0 : index
    %71 = vector.load %arg2[%c81, %c0_21] : memref<97x128xf32, #tpu.memory_space<vmem>>, vector<1x128xf32>
    %72 = vector.broadcast %71 : vector<1x128xf32> to vector<16x128xf32>
    %73 = arith.addf %70, %72 : vector<16x128xf32>
    %74 = vector.extract_strided_slice %73 {offsets = [0, 0], sizes = [16, 32], strides = [1, 1]} : vector<16x128xf32> to vector<16x32xf32>
    %75 = arith.addf %10, %74 : vector<16x32xf32>
    %c84 = arith.constant 84 : index
    %c0_22 = arith.constant 0 : index
    %76 = vector.load %arg2[%c84, %c0_22] : memref<97x128xf32, #tpu.memory_space<vmem>>, vector<1x32xf32>
    %c85 = arith.constant 85 : index
    %c0_23 = arith.constant 0 : index
    %77 = vector.load %arg2[%c85, %c0_23] : memref<97x128xf32, #tpu.memory_space<vmem>>, vector<1x32xf32>
    %cst_24 = arith.constant dense<0.000000e+00> : vector<16xf32>
    %78 = vector.multi_reduction <add>, %75, %cst_24 [1] : vector<16x32xf32> to vector<16xf32>
    %79 = vector.shape_cast %78 : vector<16xf32> to vector<16x1xf32>
    %cst_25 = arith.constant 3.200000e+01 : f32
    %80 = vector.broadcast %cst_25 : f32 to vector<16x1xf32>
    %81 = arith.divf %79, %80 : vector<16x1xf32>
    %82 = vector.broadcast %81 : vector<16x1xf32> to vector<16x32xf32>
    %83 = arith.subf %75, %82 : vector<16x32xf32>
    %84 = arith.mulf %83, %83 : vector<16x32xf32>
    %cst_26 = arith.constant dense<0.000000e+00> : vector<16xf32>
    %85 = vector.multi_reduction <add>, %84, %cst_26 [1] : vector<16x32xf32> to vector<16xf32>
    %86 = vector.shape_cast %85 : vector<16xf32> to vector<16x1xf32>
    %cst_27 = arith.constant 3.200000e+01 : f32
    %87 = vector.broadcast %cst_27 : f32 to vector<16x1xf32>
    %88 = arith.divf %86, %87 : vector<16x1xf32>
    %cst_28 = arith.constant 9.99999974E-6 : f32
    %89 = vector.broadcast %cst_28 : f32 to vector<16x1xf32>
    %90 = arith.addf %88, %89 : vector<16x1xf32>
    %91 = math.rsqrt %90 : vector<16x1xf32>
    %92 = vector.broadcast %91 : vector<16x1xf32> to vector<16x32xf32>
    %93 = arith.mulf %83, %92 : vector<16x32xf32>
    %94 = vector.broadcast %76 : vector<1x32xf32> to vector<16x32xf32>
    %95 = arith.mulf %93, %94 : vector<16x32xf32>
    %96 = vector.broadcast %77 : vector<1x32xf32> to vector<16x32xf32>
    %97 = arith.addf %95, %96 : vector<16x32xf32>
    %98 = arith.truncf %97 : vector<16x32xf32> to vector<16x32xbf16>
    %c64_29 = arith.constant 64 : index
    %c0_30 = arith.constant 0 : index
    %99 = vector.load %arg1[%c64_29, %c0_30] : memref<352x128xbf16, #tpu.memory_space<vmem>>, vector<32x128xbf16>
    %cst_31 = arith.constant dense<0.000000e+00> : vector<16x128xf32>
    %100 = tpu.matmul %98, %99, %cst_31 {dimension_numbers = #tpu.dot_dimension_numbers<[1], [0], [0], [1], [0, 0, 1, 1], [], []>} : vector<16x32xbf16>, vector<32x128xbf16>, vector<16x128xf32> -> vector<16x128xf32>
    %c82 = arith.constant 82 : index
    %c0_32 = arith.constant 0 : index
    %101 = vector.load %arg2[%c82, %c0_32] : memref<97x128xf32, #tpu.memory_space<vmem>>, vector<1x128xf32>
    %102 = vector.broadcast %101 : vector<1x128xf32> to vector<16x128xf32>
    %103 = arith.addf %100, %102 : vector<16x128xf32>
    %104 = vector.extract_strided_slice %103 {offsets = [0, 0], sizes = [16, 64], strides = [1, 1]} : vector<16x128xf32> to vector<16x64xf32>
    %cst_33 = arith.constant 5.000000e-01 : f32
    %105 = vector.broadcast %cst_33 : f32 to vector<16x64xf32>
    %106 = arith.mulf %105, %104 : vector<16x64xf32>
    %cst_34 = arith.constant 0.707106769 : f32
    %107 = vector.broadcast %cst_34 : f32 to vector<16x64xf32>
    %108 = arith.mulf %104, %107 : vector<16x64xf32>
    %109 = math.erf %108 : vector<16x64xf32>
    %cst_35 = arith.constant 1.000000e+00 : f32
    %110 = vector.broadcast %cst_35 : f32 to vector<16x64xf32>
    %111 = arith.addf %110, %109 : vector<16x64xf32>
    %112 = arith.mulf %106, %111 : vector<16x64xf32>
    %113 = arith.truncf %112 : vector<16x64xf32> to vector<16x64xbf16>
    %c96 = arith.constant 96 : index
    %c0_36 = arith.constant 0 : index
    %114 = vector.load %arg1[%c96, %c0_36] : memref<352x128xbf16, #tpu.memory_space<vmem>>, vector<64x128xbf16>
    %cst_37 = arith.constant dense<0.000000e+00> : vector<16x128xf32>
    %115 = tpu.matmul %113, %114, %cst_37 {dimension_numbers = #tpu.dot_dimension_numbers<[1], [0], [0], [1], [0, 0, 1, 1], [], []>} : vector<16x64xbf16>, vector<64x128xbf16>, vector<16x128xf32> -> vector<16x128xf32>
    %c83 = arith.constant 83 : index
    %c0_38 = arith.constant 0 : index
    %116 = vector.load %arg2[%c83, %c0_38] : memref<97x128xf32, #tpu.memory_space<vmem>>, vector<1x128xf32>
    %117 = vector.broadcast %116 : vector<1x128xf32> to vector<16x128xf32>
    %118 = arith.addf %115, %117 : vector<16x128xf32>
    %119 = vector.extract_strided_slice %118 {offsets = [0, 0], sizes = [16, 32], strides = [1, 1]} : vector<16x128xf32> to vector<16x32xf32>
    %120 = arith.addf %97, %119 : vector<16x32xf32>
    %c86 = arith.constant 86 : index
    %c0_39 = arith.constant 0 : index
    %121 = vector.load %arg2[%c86, %c0_39] : memref<97x128xf32, #tpu.memory_space<vmem>>, vector<1x32xf32>
    %c87 = arith.constant 87 : index
    %c0_40 = arith.constant 0 : index
    %122 = vector.load %arg2[%c87, %c0_40] : memref<97x128xf32, #tpu.memory_space<vmem>>, vector<1x32xf32>
    %cst_41 = arith.constant dense<0.000000e+00> : vector<16xf32>
    %123 = vector.multi_reduction <add>, %120, %cst_41 [1] : vector<16x32xf32> to vector<16xf32>
    %124 = vector.shape_cast %123 : vector<16xf32> to vector<16x1xf32>
    %cst_42 = arith.constant 3.200000e+01 : f32
    %125 = vector.broadcast %cst_42 : f32 to vector<16x1xf32>
    %126 = arith.divf %124, %125 : vector<16x1xf32>
    %127 = vector.broadcast %126 : vector<16x1xf32> to vector<16x32xf32>
    %128 = arith.subf %120, %127 : vector<16x32xf32>
    %129 = arith.mulf %128, %128 : vector<16x32xf32>
    %cst_43 = arith.constant dense<0.000000e+00> : vector<16xf32>
    %130 = vector.multi_reduction <add>, %129, %cst_43 [1] : vector<16x32xf32> to vector<16xf32>
    %131 = vector.shape_cast %130 : vector<16xf32> to vector<16x1xf32>
    %cst_44 = arith.constant 3.200000e+01 : f32
    %132 = vector.broadcast %cst_44 : f32 to vector<16x1xf32>
    %133 = arith.divf %131, %132 : vector<16x1xf32>
    %cst_45 = arith.constant 9.99999974E-6 : f32
    %134 = vector.broadcast %cst_45 : f32 to vector<16x1xf32>
    %135 = arith.addf %133, %134 : vector<16x1xf32>
    %136 = math.rsqrt %135 : vector<16x1xf32>
    %137 = vector.broadcast %136 : vector<16x1xf32> to vector<16x32xf32>
    %138 = arith.mulf %128, %137 : vector<16x32xf32>
    %139 = vector.broadcast %121 : vector<1x32xf32> to vector<16x32xf32>
    %140 = arith.mulf %138, %139 : vector<16x32xf32>
    %141 = vector.broadcast %122 : vector<1x32xf32> to vector<16x32xf32>
    %142 = arith.addf %140, %141 : vector<16x32xf32>
    %143 = arith.truncf %142 : vector<16x32xf32> to vector<16x32xbf16>
    %c160 = arith.constant 160 : index
    %c0_46 = arith.constant 0 : index
    %144 = vector.load %arg1[%c160, %c0_46] : memref<352x128xbf16, #tpu.memory_space<vmem>>, vector<32x128xbf16>
    %cst_47 = arith.constant dense<0.000000e+00> : vector<16x128xf32>
    %145 = tpu.matmul %143, %144, %cst_47 {dimension_numbers = #tpu.dot_dimension_numbers<[1], [0], [0], [1], [0, 0, 1, 1], [], []>} : vector<16x32xbf16>, vector<32x128xbf16>, vector<16x128xf32> -> vector<16x128xf32>
    %c88 = arith.constant 88 : index
    %c0_48 = arith.constant 0 : index
    %146 = vector.load %arg2[%c88, %c0_48] : memref<97x128xf32, #tpu.memory_space<vmem>>, vector<1x128xf32>
    %147 = vector.broadcast %146 : vector<1x128xf32> to vector<16x128xf32>
    %148 = arith.addf %145, %147 : vector<16x128xf32>
    %149 = vector.extract_strided_slice %148 {offsets = [0, 0], sizes = [16, 16], strides = [1, 1]} : vector<16x128xf32> to vector<16x16xf32>
    %150 = arith.truncf %149 : vector<16x16xf32> to vector<16x16xbf16>
    %151 = vector.extract_strided_slice %148 {offsets = [0, 32], sizes = [16, 16], strides = [1, 1]} : vector<16x128xf32> to vector<16x16xf32>
    %152 = arith.truncf %151 : vector<16x16xf32> to vector<16x16xbf16>
    %153 = vector.extract_strided_slice %148 {offsets = [0, 64], sizes = [16, 16], strides = [1, 1]} : vector<16x128xf32> to vector<16x16xf32>
    %154 = arith.truncf %153 : vector<16x16xf32> to vector<16x16xbf16>
    %cst_49 = arith.constant dense<0.000000e+00> : vector<16x16xf32>
    %155 = tpu.matmul %150, %152, %cst_49 {dimension_numbers = #tpu.dot_dimension_numbers<[1], [1], [0], [0], [0, 0, 1, 0], [], []>} : vector<16x16xbf16>, vector<16x16xbf16>, vector<16x16xf32> -> vector<16x16xf32>
    %156 = arith.addf %155, %22 : vector<16x16xf32>
    %cst_50 = arith.constant dense<0xFF800000> : vector<16xf32>
    %157 = vector.multi_reduction <maximumf>, %156, %cst_50 [1] : vector<16x16xf32> to vector<16xf32>
    %158 = vector.shape_cast %157 : vector<16xf32> to vector<16x1xf32>
    %159 = vector.broadcast %158 : vector<16x1xf32> to vector<16x16xf32>
    %160 = arith.subf %156, %159 : vector<16x16xf32>
    %161 = math.exp %160 : vector<16x16xf32>
    %cst_51 = arith.constant dense<0.000000e+00> : vector<16xf32>
    %162 = vector.multi_reduction <add>, %161, %cst_51 [1] : vector<16x16xf32> to vector<16xf32>
    %163 = vector.shape_cast %162 : vector<16xf32> to vector<16x1xf32>
    %164 = vector.broadcast %163 : vector<16x1xf32> to vector<16x16xf32>
    %165 = arith.divf %161, %164 : vector<16x16xf32>
    %166 = arith.truncf %165 : vector<16x16xf32> to vector<16x16xbf16>
    %cst_52 = arith.constant dense<0.000000e+00> : vector<16x16xf32>
    %167 = tpu.matmul %166, %154, %cst_52 {dimension_numbers = #tpu.dot_dimension_numbers<[1], [0], [0], [1], [0, 0, 1, 1], [], []>} : vector<16x16xbf16>, vector<16x16xbf16>, vector<16x16xf32> -> vector<16x16xf32>
    %168 = vector.extract_strided_slice %148 {offsets = [0, 16], sizes = [16, 16], strides = [1, 1]} : vector<16x128xf32> to vector<16x16xf32>
    %169 = arith.truncf %168 : vector<16x16xf32> to vector<16x16xbf16>
    %170 = vector.extract_strided_slice %148 {offsets = [0, 48], sizes = [16, 16], strides = [1, 1]} : vector<16x128xf32> to vector<16x16xf32>
    %171 = arith.truncf %170 : vector<16x16xf32> to vector<16x16xbf16>
    %172 = vector.extract_strided_slice %148 {offsets = [0, 80], sizes = [16, 16], strides = [1, 1]} : vector<16x128xf32> to vector<16x16xf32>
    %173 = arith.truncf %172 : vector<16x16xf32> to vector<16x16xbf16>
    %cst_53 = arith.constant dense<0.000000e+00> : vector<16x16xf32>
    %174 = tpu.matmul %169, %171, %cst_53 {dimension_numbers = #tpu.dot_dimension_numbers<[1], [1], [0], [0], [0, 0, 1, 0], [], []>} : vector<16x16xbf16>, vector<16x16xbf16>, vector<16x16xf32> -> vector<16x16xf32>
    %175 = arith.addf %174, %22 : vector<16x16xf32>
    %cst_54 = arith.constant dense<0xFF800000> : vector<16xf32>
    %176 = vector.multi_reduction <maximumf>, %175, %cst_54 [1] : vector<16x16xf32> to vector<16xf32>
    %177 = vector.shape_cast %176 : vector<16xf32> to vector<16x1xf32>
    %178 = vector.broadcast %177 : vector<16x1xf32> to vector<16x16xf32>
    %179 = arith.subf %175, %178 : vector<16x16xf32>
    %180 = math.exp %179 : vector<16x16xf32>
    %cst_55 = arith.constant dense<0.000000e+00> : vector<16xf32>
    %181 = vector.multi_reduction <add>, %180, %cst_55 [1] : vector<16x16xf32> to vector<16xf32>
    %182 = vector.shape_cast %181 : vector<16xf32> to vector<16x1xf32>
    %183 = vector.broadcast %182 : vector<16x1xf32> to vector<16x16xf32>
    %184 = arith.divf %180, %183 : vector<16x16xf32>
    %185 = arith.truncf %184 : vector<16x16xf32> to vector<16x16xbf16>
    %cst_56 = arith.constant dense<0.000000e+00> : vector<16x16xf32>
    %186 = tpu.matmul %185, %173, %cst_56 {dimension_numbers = #tpu.dot_dimension_numbers<[1], [0], [0], [1], [0, 0, 1, 1], [], []>} : vector<16x16xbf16>, vector<16x16xbf16>, vector<16x16xf32> -> vector<16x16xf32>
    %187 = tpu.concatenate %167, %186 in 1 : vector<16x16xf32>, vector<16x16xf32> -> vector<16x32xf32>
    %188 = arith.truncf %187 : vector<16x32xf32> to vector<16x32xbf16>
    %c192 = arith.constant 192 : index
    %c0_57 = arith.constant 0 : index
    %189 = vector.load %arg1[%c192, %c0_57] : memref<352x128xbf16, #tpu.memory_space<vmem>>, vector<32x128xbf16>
    %cst_58 = arith.constant dense<0.000000e+00> : vector<16x128xf32>
    %190 = tpu.matmul %188, %189, %cst_58 {dimension_numbers = #tpu.dot_dimension_numbers<[1], [0], [0], [1], [0, 0, 1, 1], [], []>} : vector<16x32xbf16>, vector<32x128xbf16>, vector<16x128xf32> -> vector<16x128xf32>
    %c89 = arith.constant 89 : index
    %c0_59 = arith.constant 0 : index
    %191 = vector.load %arg2[%c89, %c0_59] : memref<97x128xf32, #tpu.memory_space<vmem>>, vector<1x128xf32>
    %192 = vector.broadcast %191 : vector<1x128xf32> to vector<16x128xf32>
    %193 = arith.addf %190, %192 : vector<16x128xf32>
    %194 = vector.extract_strided_slice %193 {offsets = [0, 0], sizes = [16, 32], strides = [1, 1]} : vector<16x128xf32> to vector<16x32xf32>
    %195 = arith.addf %142, %194 : vector<16x32xf32>
    %c92 = arith.constant 92 : index
    %c0_60 = arith.constant 0 : index
    %196 = vector.load %arg2[%c92, %c0_60] : memref<97x128xf32, #tpu.memory_space<vmem>>, vector<1x32xf32>
    %c93 = arith.constant 93 : index
    %c0_61 = arith.constant 0 : index
    %197 = vector.load %arg2[%c93, %c0_61] : memref<97x128xf32, #tpu.memory_space<vmem>>, vector<1x32xf32>
    %cst_62 = arith.constant dense<0.000000e+00> : vector<16xf32>
    %198 = vector.multi_reduction <add>, %195, %cst_62 [1] : vector<16x32xf32> to vector<16xf32>
    %199 = vector.shape_cast %198 : vector<16xf32> to vector<16x1xf32>
    %cst_63 = arith.constant 3.200000e+01 : f32
    %200 = vector.broadcast %cst_63 : f32 to vector<16x1xf32>
    %201 = arith.divf %199, %200 : vector<16x1xf32>
    %202 = vector.broadcast %201 : vector<16x1xf32> to vector<16x32xf32>
    %203 = arith.subf %195, %202 : vector<16x32xf32>
    %204 = arith.mulf %203, %203 : vector<16x32xf32>
    %cst_64 = arith.constant dense<0.000000e+00> : vector<16xf32>
    %205 = vector.multi_reduction <add>, %204, %cst_64 [1] : vector<16x32xf32> to vector<16xf32>
    %206 = vector.shape_cast %205 : vector<16xf32> to vector<16x1xf32>
    %cst_65 = arith.constant 3.200000e+01 : f32
    %207 = vector.broadcast %cst_65 : f32 to vector<16x1xf32>
    %208 = arith.divf %206, %207 : vector<16x1xf32>
    %cst_66 = arith.constant 9.99999974E-6 : f32
    %209 = vector.broadcast %cst_66 : f32 to vector<16x1xf32>
    %210 = arith.addf %208, %209 : vector<16x1xf32>
    %211 = math.rsqrt %210 : vector<16x1xf32>
    %212 = vector.broadcast %211 : vector<16x1xf32> to vector<16x32xf32>
    %213 = arith.mulf %203, %212 : vector<16x32xf32>
    %214 = vector.broadcast %196 : vector<1x32xf32> to vector<16x32xf32>
    %215 = arith.mulf %213, %214 : vector<16x32xf32>
    %216 = vector.broadcast %197 : vector<1x32xf32> to vector<16x32xf32>
    %217 = arith.addf %215, %216 : vector<16x32xf32>
    %218 = arith.truncf %217 : vector<16x32xf32> to vector<16x32xbf16>
    %c224 = arith.constant 224 : index
    %c0_67 = arith.constant 0 : index
    %219 = vector.load %arg1[%c224, %c0_67] : memref<352x128xbf16, #tpu.memory_space<vmem>>, vector<32x128xbf16>
    %cst_68 = arith.constant dense<0.000000e+00> : vector<16x128xf32>
    %220 = tpu.matmul %218, %219, %cst_68 {dimension_numbers = #tpu.dot_dimension_numbers<[1], [0], [0], [1], [0, 0, 1, 1], [], []>} : vector<16x32xbf16>, vector<32x128xbf16>, vector<16x128xf32> -> vector<16x128xf32>
    %c90 = arith.constant 90 : index
    %c0_69 = arith.constant 0 : index
    %221 = vector.load %arg2[%c90, %c0_69] : memref<97x128xf32, #tpu.memory_space<vmem>>, vector<1x128xf32>
    %222 = vector.broadcast %221 : vector<1x128xf32> to vector<16x128xf32>
    %223 = arith.addf %220, %222 : vector<16x128xf32>
    %224 = vector.extract_strided_slice %223 {offsets = [0, 0], sizes = [16, 64], strides = [1, 1]} : vector<16x128xf32> to vector<16x64xf32>
    %cst_70 = arith.constant 5.000000e-01 : f32
    %225 = vector.broadcast %cst_70 : f32 to vector<16x64xf32>
    %226 = arith.mulf %225, %224 : vector<16x64xf32>
    %cst_71 = arith.constant 0.707106769 : f32
    %227 = vector.broadcast %cst_71 : f32 to vector<16x64xf32>
    %228 = arith.mulf %224, %227 : vector<16x64xf32>
    %229 = math.erf %228 : vector<16x64xf32>
    %cst_72 = arith.constant 1.000000e+00 : f32
    %230 = vector.broadcast %cst_72 : f32 to vector<16x64xf32>
    %231 = arith.addf %230, %229 : vector<16x64xf32>
    %232 = arith.mulf %226, %231 : vector<16x64xf32>
    %233 = arith.truncf %232 : vector<16x64xf32> to vector<16x64xbf16>
    %c256 = arith.constant 256 : index
    %c0_73 = arith.constant 0 : index
    %234 = vector.load %arg1[%c256, %c0_73] : memref<352x128xbf16, #tpu.memory_space<vmem>>, vector<64x128xbf16>
    %cst_74 = arith.constant dense<0.000000e+00> : vector<16x128xf32>
    %235 = tpu.matmul %233, %234, %cst_74 {dimension_numbers = #tpu.dot_dimension_numbers<[1], [0], [0], [1], [0, 0, 1, 1], [], []>} : vector<16x64xbf16>, vector<64x128xbf16>, vector<16x128xf32> -> vector<16x128xf32>
    %c91 = arith.constant 91 : index
    %c0_75 = arith.constant 0 : index
    %236 = vector.load %arg2[%c91, %c0_75] : memref<97x128xf32, #tpu.memory_space<vmem>>, vector<1x128xf32>
    %237 = vector.broadcast %236 : vector<1x128xf32> to vector<16x128xf32>
    %238 = arith.addf %235, %237 : vector<16x128xf32>
    %239 = vector.extract_strided_slice %238 {offsets = [0, 0], sizes = [16, 32], strides = [1, 1]} : vector<16x128xf32> to vector<16x32xf32>
    %240 = arith.addf %217, %239 : vector<16x32xf32>
    %c94 = arith.constant 94 : index
    %c0_76 = arith.constant 0 : index
    %241 = vector.load %arg2[%c94, %c0_76] : memref<97x128xf32, #tpu.memory_space<vmem>>, vector<1x32xf32>
    %c95 = arith.constant 95 : index
    %c0_77 = arith.constant 0 : index
    %242 = vector.load %arg2[%c95, %c0_77] : memref<97x128xf32, #tpu.memory_space<vmem>>, vector<1x32xf32>
    %cst_78 = arith.constant dense<0.000000e+00> : vector<16xf32>
    %243 = vector.multi_reduction <add>, %240, %cst_78 [1] : vector<16x32xf32> to vector<16xf32>
    %244 = vector.shape_cast %243 : vector<16xf32> to vector<16x1xf32>
    %cst_79 = arith.constant 3.200000e+01 : f32
    %245 = vector.broadcast %cst_79 : f32 to vector<16x1xf32>
    %246 = arith.divf %244, %245 : vector<16x1xf32>
    %247 = vector.broadcast %246 : vector<16x1xf32> to vector<16x32xf32>
    %248 = arith.subf %240, %247 : vector<16x32xf32>
    %249 = arith.mulf %248, %248 : vector<16x32xf32>
    %cst_80 = arith.constant dense<0.000000e+00> : vector<16xf32>
    %250 = vector.multi_reduction <add>, %249, %cst_80 [1] : vector<16x32xf32> to vector<16xf32>
    %251 = vector.shape_cast %250 : vector<16xf32> to vector<16x1xf32>
    %cst_81 = arith.constant 3.200000e+01 : f32
    %252 = vector.broadcast %cst_81 : f32 to vector<16x1xf32>
    %253 = arith.divf %251, %252 : vector<16x1xf32>
    %cst_82 = arith.constant 9.99999974E-6 : f32
    %254 = vector.broadcast %cst_82 : f32 to vector<16x1xf32>
    %255 = arith.addf %253, %254 : vector<16x1xf32>
    %256 = math.rsqrt %255 : vector<16x1xf32>
    %257 = vector.broadcast %256 : vector<16x1xf32> to vector<16x32xf32>
    %258 = arith.mulf %248, %257 : vector<16x32xf32>
    %259 = vector.broadcast %241 : vector<1x32xf32> to vector<16x32xf32>
    %260 = arith.mulf %258, %259 : vector<16x32xf32>
    %261 = vector.broadcast %242 : vector<1x32xf32> to vector<16x32xf32>
    %262 = arith.addf %260, %261 : vector<16x32xf32>
    %263 = arith.truncf %262 : vector<16x32xf32> to vector<16x32xbf16>
    %c320 = arith.constant 320 : index
    %c0_83 = arith.constant 0 : index
    %264 = vector.load %arg1[%c320, %c0_83] : memref<352x128xbf16, #tpu.memory_space<vmem>>, vector<32x128xbf16>
    %cst_84 = arith.constant dense<0.000000e+00> : vector<16x128xf32>
    %265 = tpu.matmul %263, %264, %cst_84 {dimension_numbers = #tpu.dot_dimension_numbers<[1], [0], [0], [1], [0, 0, 1, 1], [], []>} : vector<16x32xbf16>, vector<32x128xbf16>, vector<16x128xf32> -> vector<16x128xf32>
    %c96_85 = arith.constant 96 : index
    %c0_86 = arith.constant 0 : index
    %266 = vector.load %arg2[%c96_85, %c0_86] : memref<97x128xf32, #tpu.memory_space<vmem>>, vector<1x128xf32>
    %267 = vector.broadcast %266 : vector<1x128xf32> to vector<16x128xf32>
    %268 = arith.addf %265, %267 : vector<16x128xf32>
    %c0_87 = arith.constant 0 : index
    %c0_88 = arith.constant 0 : index
    %269 = vector.load %arg3[%c0_87, %c0_88] : memref<16x128xf32, #tpu.memory_space<vmem>>, vector<16x128xf32>
    tpu.vector_store %arg3[%c0_87, %c0_88], %268 {strides = array<i32>} : memref<16x128xf32, #tpu.memory_space<vmem>>, vector<16x128xf32>,
    return
  }
}

</mosaic_0001>

<bundles_post_ra>
// kernel: transformer_forward.1
= control target key start
LH: loop header
LB: loop body
LE: loop exit
PB: predicated region body
PF: predicated region fallthrough
CT: control target
= control target key end

     0   :  { %8 = vsyncpa [#allocation3], 0  ;;  %s2238_s0 = inlined_call_operand.vmem [shape: s32[16,1], index: 0, kind: input, shape index: {}]   ;;  %s2239_s1 = inlined_call_operand.hbm [shape: bf16[352,128], index: 1, kind: input, shape index: {}]   ;;  %s2240_s2 = inlined_call_operand.hbm [shape: f32[97,128], index: 2, kind: input, shape index: {}]   ;;  %s2241_s3 = inlined_call_operand.hbm [shape: f32[16,128], index: 3, kind: output, shape index: {}]  }
   0x1   :  { %9 = vsyncpa [#allocation6], 0 }
   0x2   :  { %10 = vsyncpa [#allocation4], 0  ;;  %s1964_s12 = smov [#allocation2]   ;;  %s1892_s16 = scalar_lea.hbm %s2239_s1, 2816 }
   0x3   :  { %s18_s13 = sshll.u32 %s1964_s12, 4  ;;  %p1893_p0 = scmp.ne.s32.totalorder %s2239_s1, %s1892_s16  ;;  %s19_s13 = int_to_ptr.vmem [resolvable:$true] %s18_s13 }
   0x4   :  { %p1896_p1 = scmp.lt.u32.totalorder %s1892_s16, %s2239_s1 }
   0x6   :  { %p1898_p2 = pnand %p1896_p1, %p1893_p0 }
   0x8   :  { %1901 = shalt.err (!%p1898_p2)
}
   0x9   :  { %s1902_s21 = scalar_lea.vmem %s19_s13, 2816  ;;  %p1907_p4 = scmp.lt.s32.totalorder %s19_s13, %s19_s13 }
   0xa   :  { %p1903_p3 = scmp.ne.s32.totalorder %s19_s13, %s1902_s21  ;;  %p1908_p5 = scmp.lt.s32.totalorder %s1902_s21, %s1902_s21 }
   0xc   :  { %p1909_p6 = por %p1908_p5, %p1907_p4 }
   0xe   :  { %p1910_p7 = pnand %p1909_p6, %p1903_p3 }
  0x10   :  { %1913 = shalt.err (!%p1910_p7)
}
  0x11   :  { %s1965_s22 = smov 64   ;;  %s1966_s23 = smov 4  }
  0x12   :  { %24 = dma.hbm_to_vmem [thread:$0]  %s2239_s1, 2816, %s19_s13, [#allocation3], %s1965_s22, %s1965_s22, %s1966_s23  }
  0x13   :  { %s1967_s26 = smov [#allocation5]   ;;  %s1914_s30 = scalar_lea.hbm %s2240_s2, 1664 }
  0x14   :  { %s30_s27 = sshll.u32 %s1967_s26, 4  ;;  %p1915_p8 = scmp.ne.s32.totalorder %s2240_s2, %s1914_s30  ;;  %s31_s27 = int_to_ptr.vmem [resolvable:$true] %s30_s27 }
  0x15   :  { %p1918_p9 = scmp.lt.u32.totalorder %s1914_s30, %s2240_s2 }
  0x17   :  { %p1920_p10 = pnand %p1918_p9, %p1915_p8 }
  0x19   :  { %1923 = shalt.err (!%p1920_p10)
}
  0x1a   :  { %s1924_s8 = scalar_lea.vmem %s31_s27, 1664  ;;  %p1929_p12 = scmp.lt.s32.totalorder %s31_s27, %s31_s27 }
  0x1b   :  { %p1925_p11 = scmp.ne.s32.totalorder %s31_s27, %s1924_s8  ;;  %p1930_p13 = scmp.lt.s32.totalorder %s1924_s8, %s1924_s8 }
  0x1d   :  { %p1931_p0 = por %p1930_p13, %p1929_p12 }
  0x1f   :  { %p1932_p1 = pnand %p1931_p0, %p1925_p11 }
  0x21   :  { %1935 = shalt.err (!%p1932_p1)
}
  0x22   :  { %s1968_s1 = smov 128   ;;  %s1969_s9 = smov 8  }
  0x23   :  { %36 = dma.hbm_to_vmem [thread:$0]  %s2240_s2, 1664, %s31_s27, [#allocation6], %s1968_s1, %s1968_s1, %s1969_s9  }
  0x24   :  { %1958 = dma.done.wait [#allocation3], 2816  }
  0x25   :  { %1959 = vsyncadd [#allocation3], 4294964480 }
  0x26   :  { %1960 = dma.done.wait [#allocation6], 1664  }
  0x27   :  { %1961 = vsyncadd [#allocation6], 4294965632  ;;  %v1970_v0 = vmov 0   ;;  %v44_v1 = vld [vmem:[%s2238_s0] sm:$0xff]  ;;  %v60_v2 = vld [vmem:[#allocation5] sm:$0xff]  ;;  %v1971_v10 = vmov 0.0   ;;  %v46_v17 = vlaneseq }
  0x28   :  { %1803 = vset.pattern.permute.xlu0 %v1970_v0  ;;  %v61_v3 = vld [vmem:[#allocation5 + $0x8] sm:$0xff]  ;;  %v62_v4 = vld [vmem:[#allocation5 + $0x10] sm:$0xff]  ;;  %v63_v5 = vld [vmem:[#allocation5 + $0x18] sm:$0xff]  ;;  %1643 = vmatprep.subr.bf16.mxu1 %v1971_v10  ;;  %vm70_vm0 = vcmask 523264   ;;  %vm1972_vm3 = vmmov 0   ;;  %vm188_vm4 = vcmask 261120  }
  0x29   :  { %49 = vperm.xlu0 %1803, %v44_v1   ;;  %v45_v6 = vld [vmem:[%s2238_s0 + $0x8] sm:$0xff]  ;;  %v1771_v7 = vpack.c.bf16 %v61_v3, %v60_v2  ;;  %v1775_v8 = vpack.c.bf16 %v63_v5, %v62_v4  ;;  %v64_v9 = vld [vmem:[#allocation5 + $0x20] sm:$0xff]  ;;  %v65_v11 = vld [vmem:[#allocation5 + $0x28] sm:$0xff]  ;;  %v2038_v18 = vand.u32 127, %v46_v17  ;;  %1647 = vmatprep.mubr.msk.bf16.mxu1 %vm1972_vm3, %v1971_v10  ;;  %s1973_s0 = smov 112   ;;  %s1974_s2 = smov 96  }
  0x2a   :  { %v66_v12 = vld [vmem:[#allocation5 + $0x30] sm:$0xff]  ;;  %v1779_v13 = vpack.c.bf16 %v65_v11, %v64_v9  ;;  %v67_v14 = vld [vmem:[#allocation5 + $0x38] sm:$0xff]  ;;  %v69_v24 = vld [vmem:[#allocation5 + $0x48] sm:$0xff]  ;;  %s1975_s16 = smov 80   ;;  %vm237_vm5 = vcmask 130048   ;;  %v153_v44 = vshrl.u32 %v46_v17, 7 }
  0x2b   :  { %1772 = vmatprep.subr.bf16.mxu0 %v1771_v7  ;;  %v1814_v15 = vld [vmem:[#allocation2] sm:$0xff]   ;;  %v1783_v16 = vpack.c.bf16 %v67_v14, %v66_v12  ;;  %v1815_v23 = vld [vmem:[#allocation2 + $0x8] sm:$0xff]   ;;  %v68_v25 = vld [vmem:[#allocation5 + $0x40] sm:$0xff]  ;;  %v157_v47 = vand.u32 1, %v2038_v18  ;;  %v1976_v49 = vmov -1e+30  }
  0x2c   :  { %1774 = vmatpush3.bf16.msra.mxu0 %v1771_v7  ;;  %1644 = vmatpush3.bf16.msra.mxu1 %v1814_v15  ;;  %v1511_v31 = vld [vmem:[#allocation5 + $0x50] ss:$0 sm:$0xff]  ;;  %v154_v45 = vadd.s32 8, %v153_v44  ;;  %v155_v46 = vand.u32 1, %v153_v44  ;;  %vm160_vm7 = vcmp.le.s32.totalorder %v2038_v18, %v153_v44  ;;  %s1977_s17 = smov 48   ;;  %s1978_s18 = smov 16  }
  0x2d   :  { %52 = vperm.xlu0 %1803, %v45_v6   ;;  %1776 = vmatprep.subr.bf16.mxu0 %v1775_v8  ;;  %s1979_s19 = smov [#allocation7]  }
  0x2e   :  { %1645 = vmatprep.subr.bf16.mxu1 %v1971_v10  ;;  %v156_v48 = vand.u32 1, %v154_v45  ;;  %vm158_vm6 = vcmp.eq.s32.totalorder %v155_v46, %v157_v47  ;;  %vm161_vm9 = vcmp.le.s32.totalorder %v2038_v18, %v154_v45  ;;  %v1817_v46 = vld [vmem:[#allocation2 + $0x18] sm:$0xff]   ;;  %s1494_s20 = sshll.u32 %s1979_s19, 4  ;;  %s1495_s20 = int_to_ptr.vmem [resolvable:$true] %s1494_s20 }
  0x2f   :  { %vm162_vm10 = vmand %vm158_vm6, %vm160_vm7  ;;  %s1936_s21 = scalar_lea.vmem %s1495_s20, 256  ;;  %p1941_p3 = scmp.lt.s32.totalorder %s1495_s20, %s1495_s20 }
  0x30   :  { %1778 = vmatpush3.bf16.msra.mxu0 %v1775_v8  ;;  %1646 = vmatpush3.bf16.msra.mxu1 %v1815_v23  ;;  %vm159_vm8 = vcmp.eq.s32.totalorder %v156_v48, %v157_v47  ;;  %v2082_v50 = vsel %vm162_vm10, 0.0, %v1976_v49  ;;  %p1937_p2 = scmp.ne.s32.totalorder %s1495_s20, %s1936_s21  ;;  %p1942_p4 = scmp.lt.s32.totalorder %s1936_s21, %s1936_s21 }
  0x31   :  { %1780 = vmatprep.subr.bf16.mxu0 %v1779_v13  ;;  %1651 = vmatprep.subr.bf16.mxu1 %v1971_v10  ;;  %vm163_vm11 = vmand %vm159_vm8, %vm161_vm9 }
  0x32   :  { %v2084_v52 = vsel %vm163_vm11, 0.0, %v1976_v49  ;;  %p1943_p5 = por %p1942_p4, %p1941_p3 }
  0x34   :  { %1782 = vmatpush3.bf16.msra.mxu0 %v1779_v13  ;;  %p1944_p6 = pnand %p1943_p5, %p1937_p2 }
  0x35   :  { %1784 = vmatprep.subr.bf16.mxu0 %v1783_v16 }
  0x38   :  { %1786 = vmatpush3.bf16.msra.mxu0 %v1783_v16 }
  0x39   :  { %1657 = vmatprep.subr.bf16.mxu0 %v1971_v10 }
  0xa8   :  { %v50_v19 = vpop.permute.xlu0 %49 }
  0xa9   :  { %vm54_vm1 = vcmp.eq.s32.totalorder %v50_v19, %v2038_v18 }
  0xaa   :  { %v1507_v20 = vsel %vm54_vm1, 1.0, %v1971_v10 }
  0xab   :  { %1640 = vmatprep.mubr.msk.f32.mxu0 %vm70_vm0, %v1507_v20 }
  0xac   :  { %v53_v21 = vpop.permute.xlu0 %52 }
  0xad   :  { %vm55_vm2 = vcmp.eq.s32.totalorder %v53_v21, %v2038_v18 }
  0xae   :  { %v1508_v22 = vsel %vm55_vm2, 1.0, %v1971_v10 }
  0xaf   :  { %1641 = vmatmul.mubr.msk.f32.vlgmr.msra.gmra.mrb[0].mxu0 %vm70_vm0, %v1508_v22 }
  0xb0   :  { %1659 = vmatprep.mubr.msk.bf16.mxu0 %vm1972_vm3, %v1971_v10 }
 0x182   :  { %v1642_v26 = vpop.f32.mrb[0].mxu0 }
 0x183   :  { %v2051_v27 = vadd.f32 %v1642_v26, %v69_v24  ;;  %v143_v28 = vpop.f32.mrb[1].mxu0 }
 0x184   :  { %v2053_v29 = vadd.f32 %v143_v28, %v68_v25 }
 0x186   :  { %v166_v30 = vpack.c.bf16 %v2051_v27, %v2053_v29 }
 0x188   :  { %1648 = vmatmul.mubr.msk.bf16.vlgmr.msra.gmra.mrb[0].mxu1 %vm188_vm4, %v166_v30 }
 0x189   :  { %1653 = vmatprep.mubr.msk.bf16.mxu1 %vm1972_vm3, %v1971_v10 }
 0x25b   :  { %v226_v32 = vpop.f32.mrb[0].mxu1 }
 0x25c   :  { %v1649_v33 = vpop.f32.mrb[1].mxu1  ;;  %v227_v35 = vadd.f32 %v1511_v31, %v226_v32 }
 0x25d   :  { %v229_v34 = vpop.f32.mrb[2].mxu1 }
 0x25e   :  { %v230_v36 = vadd.f32 %v1511_v31, %v229_v34  ;;  %v1650_v37 = vpop.f32.mrb[3].mxu1 }
 0x260   :  { %v2060_v38 = vpack.c.bf16 %v230_v36, %v227_v35 }
 0x262   :  { %355 = vrot.lane.b32.xlu0 %v2060_v38, %s1973_s0  ;;  %235 = vrot.lane.b32.xlu1 %v2060_v38, %s1974_s2 }
 0x266   :  { %357 = vrot.lane.b32.xlu1 %v2060_v38, %s1975_s16 }
 0x2d4   :  { %v236_v39 = vpop.permute.xlu1 %235  ;;  %v356_v43 = vpop.permute.xlu0 %355 }
 0x2d5   :  { %v242_v40 = vsel %vm237_vm5, %v236_v39, 0 }
 0x2d6   :  { %1652 = vmatpush3.bf16.xpose.msra.mxu1 %v242_v40 }
 0x2d7   :  { %1663 = vmatprep.subr.bf16.mxu1 %v1971_v10 }
 0x2d8   :  { %v358_v41 = vpop.permute.xlu1 %357 }
 0x2d9   :  { %v363_v42 = vsel %vm237_vm5, %v358_v41, 0 }
 0x2dd   :  { %1654 = vmatmul.mubr.msk.bf16.vlgmr.msra.gmra.mrb[4].mxu1 %vm237_vm5, %v2060_v38 }
 0x2de   :  { %1664 = vmatpush3.bf16.xpose.msra.mxu1 %v363_v42  ;;  %1665 = vmatprep.mubr.msk.bf16.mxu1 %vm1972_vm3, %v1971_v10 }
 0x2df   :  { %1675 = vmatprep.subr.bf16.mxu1 %v1971_v10 }
 0x2e5   :  { %1666 = vmatmul.mubr.msk.bf16.vlgmr.msra.gmra.mrb[8].mxu1 %vm237_vm5, %v356_v43  ;;  %v1816_v43 = vld [vmem:[#allocation2 + $0x10] sm:$0xff]  }
 0x2e6   :  { %1679 = vmatprep.mubr.msk.bf16.mxu1 %vm1972_vm3, %v1971_v10  ;;  %1676 = vmatpush3.bf16.msra.mxu1 %v1816_v43  ;;  %v1525_v43 = vld [vmem:[#allocation5 + $0x52] ss:$0 sm:$0xff] }
 0x2e7   :  { %1677 = vmatprep.subr.bf16.mxu1 %v1971_v10 }
 0x2ea   :  { %1678 = vmatpush3.bf16.msra.mxu1 %v1817_v46 }
 0x2eb   :  { %1691 = vmatprep.subr.bf16.mxu1 %v1971_v10 }
 0x3b0   :  { %v278_v51 = vpop.f32.mrb[4].mxu1 }
 0x3b1   :  { %v279_v53 = vadd.f32 %v278_v51, %v2082_v50  ;;  %v1655_v54 = vpop.f32.mrb[5].mxu1 }
 0x3b2   :  { %v281_v55 = vpop.f32.mrb[6].mxu1 }
 0x3b3   :  { %v282_v56 = vadd.f32 %v281_v55, %v2084_v52  ;;  %v1656_v57 = vpop.f32.mrb[7].mxu1  ;;  %v285_v58 = vsel %vm237_vm5, %v279_v53, -inf }
 0x3b4   :  { %286 = vmax.xlane.f32.xlu1 %v285_v58 }
 0x3b5   :  { %v288_v59 = vsel %vm237_vm5, %v282_v56, -inf }
 0x3b6   :  { %289 = vmax.xlane.f32.xlu0 %v288_v59 }
 0x3b8   :  { %v399_v60 = vpop.f32.mrb[8].mxu1 }
 0x3b9   :  { %v400_v61 = vadd.f32 %v399_v60, %v2082_v50  ;;  %v1667_v62 = vpop.f32.mrb[9].mxu1 }
 0x3ba   :  { %v402_v63 = vpop.f32.mrb[10].mxu1  ;;  %v1519_v62 = vld [vmem:[#allocation5 + $0x51] ss:$0 sm:$0xff] }
 0x3bb   :  { %v403_v0 = vadd.f32 %v402_v63, %v2084_v52  ;;  %v1668_v1 = vpop.f32.mrb[11].mxu1  ;;  %v406_v2 = vsel %vm237_vm5, %v400_v61, -inf }
 0x3bc   :  { %407 = vmax.xlane.f32.xlu0 %v406_v2 }
 0x3bd   :  { %v409_v3 = vsel %vm237_vm5, %v403_v0, -inf }
 0x3be   :  { %410 = vmax.xlane.f32.xlu1 %v409_v3 }
 0x441   :  { %v287_v4 = vpop.xlane.xlu1 %286 }
 0x442   :  { %v291_v5 = vsub.f32 %v279_v53, %v287_v4 }
 0x443   :  { %v290_v6 = vpop.xlane.xlu0 %289 }
 0x444   :  { %v293_v7 = vmul.f32 1.442695, %v291_v5  ;;  %v292_v8 = vsub.f32 %v282_v56, %v290_v6 }
 0x446   :  { %1836 = vpow2.f32 %v293_v7  ;;  %v295_v9 = vmul.f32 1.442695, %v292_v8 }
 0x448   :  { %1838 = vpow2.f32 %v295_v9 }
 0x449   :  { %v408_v11 = vpop.xlane.xlu0 %407 }
 0x44a   :  { %v412_v12 = vsub.f32 %v400_v61, %v408_v11 }
 0x44b   :  { %v411_v13 = vpop.xlane.xlu1 %410 }
 0x44c   :  { %v414_v14 = vmul.f32 1.442695, %v412_v12  ;;  %v413_v15 = vsub.f32 %v403_v0, %v411_v13 }
 0x44e   :  { %1840 = vpow2.f32 %v414_v14  ;;  %v416_v16 = vmul.f32 1.442695, %v413_v15 }
 0x450   :  { %v1837_v17 = vpop.eup %1836  ;;  %1842 = vpow2.f32 %v416_v16 }
 0x451   :  { %v297_v18 = vsel %vm237_vm5, %v1837_v17, 0.0 }
 0x452   :  { %v1839_v19 = vpop.eup %1838  ;;  %298 = vadd.xlane.f32.xlu0 %v297_v18 }
 0x453   :  { %v300_v20 = vsel %vm237_vm5, %v1839_v19, 0.0 }
 0x454   :  { %301 = vadd.xlane.f32.xlu1 %v300_v20 }
 0x458   :  { %v1841_v21 = vpop.eup %1840 }
 0x459   :  { %v418_v22 = vsel %vm237_vm5, %v1841_v21, 0.0 }
 0x45a   :  { %v1843_v23 = vpop.eup %1842  ;;  %419 = vadd.xlane.f32.xlu0 %v418_v22 }
 0x45b   :  { %v421_v24 = vsel %vm237_vm5, %v1843_v23, 0.0 }
 0x45c   :  { %422 = vadd.xlane.f32.xlu1 %v421_v24 }
 0x46d   :  { %429 = vrot.lane.b32.xlu1 %v2060_v38, %s1977_s17 }
 0x470   :  { %308 = vrot.lane.b32.xlu0 %v2060_v38, %s1965_s22 }
 0x4df   :  { %v299_v25 = vpop.xlane.xlu0 %298 }
 0x4e0   :  { %1844 = vrcp.f32 %v299_v25 }
 0x4e1   :  { %v302_v26 = vpop.xlane.xlu1 %301 }
 0x4e2   :  { %1846 = vrcp.f32 %v302_v26 }
 0x4e7   :  { %v420_v28 = vpop.xlane.xlu0 %419 }
 0x4e8   :  { %1848 = vrcp.f32 %v420_v28 }
 0x4e9   :  { %v423_v30 = vpop.xlane.xlu1 %422 }
 0x4ea   :  { %v1845_v31 = vpop.eup %1844  ;;  %1850 = vrcp.f32 %v423_v30  ;;  %v1523_v30 = vld [vmem:[#allocation5 + $0x54] ss:$0 sm:$0xff] }
 0x4eb   :  { %v309_v32 = vpop.permute.xlu0 %308  ;;  %v304_v34 = vmul.f32 %v1845_v31, %v1837_v17 }
 0x4ec   :  { %v1847_v33 = vpop.eup %1846  ;;  %1658 = vmatpush3.bf16.msra.mxu0 %v309_v32 }
 0x4ed   :  { %v306_v35 = vmul.f32 %v1847_v33, %v1839_v19  ;;  %1669 = vmatprep.subr.bf16.mxu0 %v1971_v10  ;;  %v430_v37 = vpop.permute.xlu1 %429  ;;  %v1818_v19 = vld [vmem:[#allocation2 + $0x20] sm:$0xff]  }
 0x4ef   :  { %v307_v36 = vpack.c.bf16 %v306_v35, %v304_v34  ;;  %v1524_v34 = vld [vmem:[#allocation5 + $0x55] ss:$0 sm:$0xff] }
 0x4f1   :  { %1660 = vmatmul.mubr.msk.bf16.vlgmr.msra.gmra.mrb[4].mxu0 %vm237_vm5, %v307_v36 }
 0x4f2   :  { %v1849_v38 = vpop.eup %1848  ;;  %1670 = vmatpush3.bf16.msra.mxu0 %v430_v37  ;;  %1671 = vmatprep.mubr.msk.bf16.mxu0 %vm1972_vm3, %v1971_v10 }
 0x4f3   :  { %1683 = vmatprep.subr.bf16.mxu0 %v1971_v10  ;;  %v425_v40 = vmul.f32 %v1849_v38, %v1841_v21 }
 0x4f4   :  { %v1851_v39 = vpop.eup %1850 }
 0x4f5   :  { %v427_v41 = vmul.f32 %v1851_v39, %v1843_v23  ;;  %v1820_v39 = vld [vmem:[#allocation2 + $0x30] sm:$0xff]  }
 0x4f7   :  { %v428_v42 = vpack.c.bf16 %v427_v41, %v425_v40  ;;  %v1821_v40 = vld [vmem:[#allocation2 + $0x38] sm:$0xff]   ;;  %v1822_v41 = vld [vmem:[#allocation2 + $0x40] sm:$0xff]  }
 0x4f9   :  { %1672 = vmatmul.mubr.msk.bf16.vlgmr.msra.gmra.mrb[8].mxu0 %vm237_vm5, %v428_v42  ;;  %v1823_v42 = vld [vmem:[#allocation2 + $0x48] sm:$0xff]  }
 0x4fa   :  { %1687 = vmatprep.mubr.msk.bf16.mxu0 %vm1972_vm3, %v1971_v10  ;;  %1684 = vmatpush3.bf16.msra.mxu0 %v1818_v19 }
 0x4fb   :  { %1685 = vmatprep.subr.bf16.mxu0 %v1971_v10 }
 0x5c4   :  { %v348_v44 = vpop.f32.mrb[4].mxu0 }
 0x5c5   :  { %v1661_v45 = vpop.f32.mrb[5].mxu0 }
 0x5c6   :  { %v351_v47 = vpop.f32.mrb[6].mxu0 }
 0x5c7   :  { %v1662_v48 = vpop.f32.mrb[7].mxu0 }
 0x5cc   :  { %v469_v49 = vpop.f32.mrb[8].mxu0 }
 0x5cd   :  { %v1673_v51 = vpop.f32.mrb[9].mxu0 }
 0x5ce   :  { %v472_v53 = vpop.f32.mrb[10].mxu0 }
 0x5cf   :  { %v1804_v54 = vpack.i.bf16 %v472_v53, %v469_v49  ;;  %v1674_v55 = vpop.f32.mrb[11].mxu0 }
 0x5d1   :  { %1805 = vrot.lane.b32.xlu1 %v1804_v54, %s1978_s18 }
 0x643   :  { %v1806_v56 = vpop.permute.xlu1 %1805 }
 0x644   :  { %v1808_v57 = vunpack.i.h.bf16 %v1806_v56  ;;  %v1807_v58 = vunpack.i.l.bf16 %v1806_v56 }
 0x646   :  { %v485_v59 = vsel %vm237_vm5, %v351_v47, %v1808_v57  ;;  %v484_v60 = vsel %vm237_vm5, %v348_v44, %v1807_v58 }
 0x647   :  { %v486_v61 = vpack.c.bf16 %v485_v59, %v484_v60 }
 0x649   :  { %1680 = vmatmul.mubr.msk.bf16.vlgmr.msra.gmra.mrb[12].mxu1 %vm188_vm4, %v486_v61 }
 0x64a   :  { %1699 = vmatprep.mubr.msk.bf16.mxu1 %vm1972_vm3, %v1971_v10  ;;  %1692 = vmatpush3.bf16.msra.mxu1 %v1820_v39 }
 0x64b   :  { %1693 = vmatprep.subr.bf16.mxu1 %v1971_v10 }
 0x64e   :  { %1694 = vmatpush3.bf16.msra.mxu1 %v1821_v40  ;;  %v1537_v40 = vld [vmem:[#allocation5 + $0x58] ss:$0 sm:$0xff] }
 0x64f   :  { %1695 = vmatprep.subr.bf16.mxu1 %v1971_v10 }
 0x652   :  { %1696 = vmatpush3.bf16.msra.mxu1 %v1822_v41 }
 0x653   :  { %1697 = vmatprep.subr.bf16.mxu1 %v1971_v10 }
 0x656   :  { %1698 = vmatpush3.bf16.msra.mxu1 %v1823_v42 }
 0x657   :  { %1717 = vmatprep.subr.bf16.mxu1 %v1971_v10 }
 0x71c   :  { %v545_v63 = vpop.f32.mrb[12].mxu1 }
 0x71d   :  { %v546_v0 = vadd.f32 %v1519_v62, %v545_v63  ;;  %v1681_v1 = vpop.f32.mrb[13].mxu1  ;;  %v1529_v63 = vld [vmem:[#allocation5 + $0x53] ss:$0 sm:$0xff] }
 0x71e   :  { %v548_v2 = vpop.f32.mrb[14].mxu1 }
 0x71f   :  { %v549_v3 = vadd.f32 %v1519_v62, %v548_v2  ;;  %v1682_v4 = vpop.f32.mrb[15].mxu1  ;;  %v552_v5 = vadd.f32 %v546_v0, %v2053_v29 }
 0x721   :  { %v556_v6 = vsel %vm188_vm4, %v552_v5, 0.0  ;;  %v553_v7 = vadd.f32 %v549_v3, %v2051_v27  ;;  %v1819_v27 = vld [vmem:[#allocation2 + $0x28] sm:$0xff]  }
 0x722   :  { %557 = vadd.xlane.f32.xlu0 %v556_v6  ;;  %1686 = vmatpush3.bf16.msra.mxu0 %v1819_v27  ;;  %v1824_v27 = vld [vmem:[#allocation2 + $0x50] sm:$0xff]  }
 0x723   :  { %v559_v8 = vsel %vm188_vm4, %v553_v7, 0.0  ;;  %1703 = vmatprep.subr.bf16.mxu0 %v1971_v10 }
 0x724   :  { %560 = vadd.xlane.f32.xlu1 %v559_v8 }
 0x7af   :  { %v558_v9 = vpop.xlane.xlu0 %557 }
 0x7b0   :  { %v563_v11 = vmul.f32 0.03125, %v558_v9 }
 0x7b1   :  { %v561_v12 = vpop.xlane.xlu1 %560 }
 0x7b2   :  { %v565_v13 = vsub.f32 %v552_v5, %v563_v11  ;;  %v564_v14 = vmul.f32 0.03125, %v561_v12 }
 0x7b4   :  { %v566_v15 = vsub.f32 %v553_v7, %v564_v14  ;;  %v567_v16 = vmul.f32 %v565_v13, %v565_v13 }
 0x7b6   :  { %v569_v17 = vsel %vm188_vm4, %v567_v16, 0.0  ;;  %v568_v18 = vmul.f32 %v566_v15, %v566_v15 }
 0x7b7   :  { %570 = vadd.xlane.f32.xlu0 %v569_v17 }
 0x7b8   :  { %v572_v29 = vsel %vm188_vm4, %v568_v18, 0.0 }
 0x7bb   :  { %573 = vadd.xlane.f32.xlu0 %v572_v29 }
 0x844   :  { %v571_v20 = vpop.xlane.xlu0 %570 }
 0x845   :  { %v575_v21 = vmul.f32 0.03125, %v571_v20  ;;  %v1825_v20 = vld [vmem:[#allocation2 + $0x58] sm:$0xff]  }
 0x847   :  { %v577_v22 = vadd.f32 1e-05, %v575_v21 }
 0x848   :  { %v574_v23 = vpop.xlane.xlu0 %573 }
 0x849   :  { %1852 = vrsqrt.f32 %v577_v22  ;;  %v576_v24 = vmul.f32 0.03125, %v574_v23 }
 0x84b   :  { %v578_v25 = vadd.f32 1e-05, %v576_v24 }
 0x84d   :  { %1854 = vrsqrt.f32 %v578_v25 }
 0x853   :  { %v1853_v26 = vpop.eup %1852 }
 0x854   :  { %v581_v28 = vmul.f32 %v1853_v26, %v565_v13 }
 0x856   :  { %v587_v32 = vmul.f32 %v1523_v30, %v581_v28 }
 0x857   :  { %v1855_v31 = vpop.eup %1854 }
 0x858   :  { %v582_v33 = vmul.f32 %v1855_v31, %v566_v15  ;;  %v593_v36 = vadd.f32 %v1524_v34, %v587_v32 }
 0x85a   :  { %v588_v35 = vmul.f32 %v1523_v30, %v582_v33  ;;  %v1535_v30 = vld [vmem:[#allocation5 + $0x56] ss:$0 sm:$0xff] }
 0x85c   :  { %v594_v37 = vadd.f32 %v1524_v34, %v588_v35  ;;  %v1536_v35 = vld [vmem:[#allocation5 + $0x57] ss:$0 sm:$0xff] }
 0x85e   :  { %v595_v38 = vpack.c.bf16 %v594_v37, %v593_v36 }
 0x860   :  { %1688 = vmatmul.mubr.msk.bf16.vlgmr.msra.gmra.mrb[12].mxu0 %vm188_vm4, %v595_v38 }
 0x861   :  { %1707 = vmatprep.mubr.msk.bf16.mxu0 %vm1972_vm3, %v1971_v10  ;;  %1704 = vmatpush3.bf16.msra.mxu0 %v1824_v27 }
 0x862   :  { %1705 = vmatprep.subr.bf16.mxu0 %v1971_v10 }
 0x865   :  { %1706 = vmatpush3.bf16.msra.mxu0 %v1825_v20 }
 0x866   :  { %1711 = vmatprep.subr.bf16.mxu0 %v1971_v10 }
 0x933   :  { %v654_v44 = vpop.f32.mrb[12].mxu0 }
 0x934   :  { %v655_v45 = vadd.f32 %v1525_v43, %v654_v44  ;;  %v1689_v46 = vpop.f32.mrb[13].mxu0 }
 0x935   :  { %v657_v47 = vpop.f32.mrb[14].mxu0 }
 0x936   :  { %v663_v48 = vmul.f32 0.70710677, %v655_v45  ;;  %v658_v49 = vadd.f32 %v1525_v43, %v657_v47  ;;  %v1690_v51 = vpop.f32.mrb[15].mxu0  ;;  %v661_v57 = vmul.f32 0.5, %v655_v45 }
 0x938   :  { %1856 = verf.f32 %v663_v48  ;;  %v664_v53 = vmul.f32 0.70710677, %v658_v49  ;;  %v662_v58 = vmul.f32 0.5, %v658_v49 }
 0x93a   :  { %1858 = verf.f32 %v664_v53 }
 0x942   :  { %v1857_v54 = vpop.eup %1856 }
 0x943   :  { %v667_v55 = vadd.f32 1.0, %v1857_v54 }
 0x944   :  { %v1859_v56 = vpop.eup %1858 }
 0x945   :  { %v668_v59 = vadd.f32 1.0, %v1859_v56  ;;  %v669_v60 = vmul.f32 %v667_v55, %v661_v57 }
 0x947   :  { %v670_v61 = vmul.f32 %v668_v59, %v662_v58 }
 0x949   :  { %v671_v62 = vpack.c.bf16 %v670_v61, %v669_v60 }
 0x94b   :  { %1700 = vmatmul.mubr.msk.bf16.vlgmr.msra.gmra.mrb[16].mxu1 %vm70_vm0, %v671_v62 }
 0x94c   :  { %1719 = vmatprep.mubr.msk.bf16.mxu1 %vm1972_vm3, %v1971_v10 }
 0xa1e   :  { %v746_v0 = vpop.f32.mrb[16].mxu1 }
 0xa1f   :  { %v747_v1 = vadd.f32 %v1529_v63, %v746_v0  ;;  %v1701_v2 = vpop.f32.mrb[17].mxu1 }
 0xa20   :  { %v749_v3 = vpop.f32.mrb[18].mxu1 }
 0xa21   :  { %v750_v4 = vadd.f32 %v1529_v63, %v749_v3  ;;  %v1702_v5 = vpop.f32.mrb[19].mxu1  ;;  %v753_v6 = vadd.f32 %v747_v1, %v593_v36 }
 0xa23   :  { %v757_v7 = vsel %vm188_vm4, %v753_v6, 0.0  ;;  %v754_v8 = vadd.f32 %v750_v4, %v594_v37 }
 0xa24   :  { %758 = vadd.xlane.f32.xlu1 %v757_v7 }
 0xa25   :  { %v760_v9 = vsel %vm188_vm4, %v754_v8, 0.0 }
 0xa26   :  { %761 = vadd.xlane.f32.xlu0 %v760_v9 }
 0xab1   :  { %v759_v11 = vpop.xlane.xlu1 %758 }
 0xab2   :  { %v763_v12 = vmul.f32 0.03125, %v759_v11 }
 0xab3   :  { %v762_v13 = vpop.xlane.xlu0 %761 }
 0xab4   :  { %v765_v14 = vsub.f32 %v753_v6, %v763_v12  ;;  %v764_v15 = vmul.f32 0.03125, %v762_v13 }
 0xab6   :  { %v766_v16 = vsub.f32 %v754_v8, %v764_v15  ;;  %v767_v17 = vmul.f32 %v765_v14, %v765_v14 }
 0xab8   :  { %v769_v18 = vsel %vm188_vm4, %v767_v17, 0.0  ;;  %v768_v29 = vmul.f32 %v766_v16, %v766_v16 }
 0xab9   :  { %770 = vadd.xlane.f32.xlu1 %v769_v18 }
 0xaba   :  { %v772_v19 = vsel %vm188_vm4, %v768_v29, 0.0 }
 0xabb   :  { %773 = vadd.xlane.f32.xlu0 %v772_v19 }
 0xb46   :  { %v771_v21 = vpop.xlane.xlu1 %770 }
 0xb47   :  { %v775_v22 = vmul.f32 0.03125, %v771_v21 }
 0xb48   :  { %v774_v23 = vpop.xlane.xlu0 %773 }
 0xb49   :  { %v777_v24 = vadd.f32 1e-05, %v775_v22  ;;  %v776_v25 = vmul.f32 0.03125, %v774_v23 }
 0xb4b   :  { %1860 = vrsqrt.f32 %v777_v24  ;;  %v778_v26 = vadd.f32 1e-05, %v776_v25 }
 0xb4d   :  { %1862 = vrsqrt.f32 %v778_v26 }
 0xb55   :  { %v1861_v28 = vpop.eup %1860 }
 0xb56   :  { %v781_v31 = vmul.f32 %v1861_v28, %v765_v14 }
 0xb57   :  { %v1863_v32 = vpop.eup %1862 }
 0xb58   :  { %v787_v33 = vmul.f32 %v1535_v30, %v781_v31  ;;  %v782_v34 = vmul.f32 %v1863_v32, %v766_v16 }
 0xb5a   :  { %v788_v36 = vmul.f32 %v1535_v30, %v782_v34  ;;  %v2142_v37 = vadd.f32 %v1536_v35, %v787_v33 }
 0xb5c   :  { %v2144_v38 = vadd.f32 %v1536_v35, %v788_v36 }
 0xb5e   :  { %v795_v39 = vpack.c.bf16 %v2144_v38, %v2142_v37 }
 0xb60   :  { %1708 = vmatmul.mubr.msk.bf16.vlgmr.msra.gmra.mrb[16].mxu0 %vm188_vm4, %v795_v39 }
 0xb61   :  { %1713 = vmatprep.mubr.msk.bf16.mxu0 %vm1972_vm3, %v1971_v10 }
 0xc33   :  { %v854_v41 = vpop.f32.mrb[16].mxu0 }
 0xc34   :  { %v1709_v42 = vpop.f32.mrb[17].mxu0  ;;  %v855_v44 = vadd.f32 %v1537_v40, %v854_v41 }
 0xc35   :  { %v857_v43 = vpop.f32.mrb[18].mxu0 }
 0xc36   :  { %v858_v45 = vadd.f32 %v1537_v40, %v857_v43  ;;  %v1710_v46 = vpop.f32.mrb[19].mxu0 }
 0xc38   :  { %v2151_v47 = vpack.c.bf16 %v858_v45, %v855_v44  ;;  %v1826_v44 = vld [vmem:[#allocation2 + $0x60] sm:$0xff]  }
 0xc3a   :  { %984 = vrot.lane.b32.xlu0 %v2151_v47, %s1975_s16  ;;  %863 = vrot.lane.b32.xlu1 %v2151_v47, %s1974_s2 }
 0xc3e   :  { %982 = vrot.lane.b32.xlu1 %v2151_v47, %s1973_s0 }
 0xcac   :  { %v864_v48 = vpop.permute.xlu1 %863  ;;  %v985_v51 = vpop.permute.xlu0 %984 }
 0xcad   :  { %v869_v49 = vsel %vm237_vm5, %v864_v48, 0  ;;  %v990_v53 = vsel %vm237_vm5, %v985_v51, 0 }
 0xcae   :  { %1712 = vmatpush3.bf16.xpose.msra.mxu0 %v869_v49 }
 0xcaf   :  { %1723 = vmatprep.subr.bf16.mxu0 %v1971_v10 }
 0xcb0   :  { %v983_v54 = vpop.permute.xlu1 %982 }
 0xcb5   :  { %1714 = vmatmul.mubr.msk.bf16.vlgmr.msra.gmra.mrb[20].mxu0 %vm237_vm5, %v2151_v47 }
 0xcb6   :  { %1724 = vmatpush3.bf16.xpose.msra.mxu0 %v990_v53  ;;  %1725 = vmatprep.mubr.msk.bf16.mxu0 %vm1972_vm3, %v1971_v10 }
 0xcb7   :  { %1735 = vmatprep.subr.bf16.mxu0 %v1971_v10 }
 0xcbd   :  { %1726 = vmatmul.mubr.msk.bf16.vlgmr.msra.gmra.mrb[24].mxu0 %vm237_vm5, %v983_v54 }
 0xcbe   :  { %1739 = vmatprep.mubr.msk.bf16.mxu0 %vm1972_vm3, %v1971_v10  ;;  %1736 = vmatpush3.bf16.msra.mxu0 %v1826_v44 }
 0xcbf   :  { %1737 = vmatprep.subr.bf16.mxu0 %v1971_v10 }
 0xd88   :  { %v905_v55 = vpop.f32.mrb[20].mxu0 }
 0xd89   :  { %v906_v56 = vadd.f32 %v905_v55, %v2082_v50  ;;  %v1715_v57 = vpop.f32.mrb[21].mxu0 }
 0xd8a   :  { %v908_v58 = vpop.f32.mrb[22].mxu0 }
 0xd8b   :  { %v909_v59 = vadd.f32 %v908_v58, %v2084_v52  ;;  %v1716_v60 = vpop.f32.mrb[23].mxu0  ;;  %v912_v61 = vsel %vm237_vm5, %v906_v56, -inf }
 0xd8c   :  { %913 = vmax.xlane.f32.xlu1 %v912_v61 }
 0xd8d   :  { %v915_v62 = vsel %vm237_vm5, %v909_v59, -inf }
 0xd8e   :  { %916 = vmax.xlane.f32.xlu0 %v915_v62 }
 0xd90   :  { %v1026_v63 = vpop.f32.mrb[24].mxu0 }
 0xd91   :  { %v1027_v0 = vadd.f32 %v1026_v63, %v2082_v50  ;;  %v1727_v1 = vpop.f32.mrb[25].mxu0  ;;  %v1545_v63 = vld [vmem:[#allocation5 + $0x59] ss:$0 sm:$0xff] }
 0xd92   :  { %v1029_v2 = vpop.f32.mrb[26].mxu0 }
 0xd93   :  { %v1030_v3 = vadd.f32 %v1029_v2, %v2084_v52  ;;  %v1728_v4 = vpop.f32.mrb[27].mxu0  ;;  %v1033_v5 = vsel %vm237_vm5, %v1027_v0, -inf }
 0xd94   :  { %1034 = vmax.xlane.f32.xlu0 %v1033_v5 }
 0xd95   :  { %v1036_v6 = vsel %vm237_vm5, %v1030_v3, -inf }
 0xd96   :  { %1037 = vmax.xlane.f32.xlu1 %v1036_v6 }
 0xe19   :  { %v914_v7 = vpop.xlane.xlu1 %913 }
 0xe1a   :  { %v918_v8 = vsub.f32 %v906_v56, %v914_v7 }
 0xe1b   :  { %v917_v9 = vpop.xlane.xlu0 %916 }
 0xe1c   :  { %v920_v11 = vmul.f32 1.442695, %v918_v8  ;;  %v919_v12 = vsub.f32 %v909_v59, %v917_v9 }
 0xe1e   :  { %1864 = vpow2.f32 %v920_v11  ;;  %v922_v13 = vmul.f32 1.442695, %v919_v12 }
 0xe20   :  { %1866 = vpow2.f32 %v922_v13 }
 0xe21   :  { %v1035_v50 = vpop.xlane.xlu0 %1034 }
 0xe22   :  { %v1039_v14 = vsub.f32 %v1027_v0, %v1035_v50 }
 0xe23   :  { %v1038_v15 = vpop.xlane.xlu1 %1037 }
 0xe24   :  { %v1041_v16 = vmul.f32 1.442695, %v1039_v14  ;;  %v1040_v52 = vsub.f32 %v1030_v3, %v1038_v15 }
 0xe26   :  { %1868 = vpow2.f32 %v1041_v16  ;;  %v1043_v17 = vmul.f32 1.442695, %v1040_v52 }
 0xe28   :  { %v1865_v18 = vpop.eup %1864  ;;  %1870 = vpow2.f32 %v1043_v17 }
 0xe29   :  { %v924_v29 = vsel %vm237_vm5, %v1865_v18, 0.0 }
 0xe2a   :  { %v1867_v19 = vpop.eup %1866  ;;  %925 = vadd.xlane.f32.xlu0 %v924_v29 }
 0xe2b   :  { %v927_v27 = vsel %vm237_vm5, %v1867_v19, 0.0 }
 0xe2c   :  { %928 = vadd.xlane.f32.xlu1 %v927_v27 }
 0xe30   :  { %v1869_v20 = vpop.eup %1868 }
 0xe31   :  { %v1045_v21 = vsel %vm237_vm5, %v1869_v20, 0.0 }
 0xe32   :  { %v1871_v22 = vpop.eup %1870  ;;  %1046 = vadd.xlane.f32.xlu0 %v1045_v21 }
 0xe33   :  { %v1048_v23 = vsel %vm237_vm5, %v1871_v22, 0.0 }
 0xe34   :  { %1049 = vadd.xlane.f32.xlu1 %v1048_v23 }
 0xe45   :  { %1056 = vrot.lane.b32.xlu1 %v2151_v47, %s1977_s17 }
 0xe48   :  { %935 = vrot.lane.b32.xlu0 %v2151_v47, %s1965_s22  ;;  %v1827_v47 = vld [vmem:[#allocation2 + $0x68] sm:$0xff]  }
 0xe49   :  { %1738 = vmatpush3.bf16.msra.mxu0 %v1827_v47 }
 0xe4a   :  { %1751 = vmatprep.subr.bf16.mxu0 %v1971_v10 }
 0xeb7   :  { %v926_v24 = vpop.xlane.xlu0 %925 }
 0xeb8   :  { %1872 = vrcp.f32 %v926_v24 }
 0xeb9   :  { %v929_v25 = vpop.xlane.xlu1 %928 }
 0xeba   :  { %1874 = vrcp.f32 %v929_v25  ;;  %v1549_v25 = vld [vmem:[#allocation5 + $0x5c] ss:$0 sm:$0xff] }
 0xebf   :  { %v1047_v26 = vpop.xlane.xlu0 %1046 }
 0xec0   :  { %1876 = vrcp.f32 %v1047_v26 }
 0xec1   :  { %v1050_v28 = vpop.xlane.xlu1 %1049 }
 0xec2   :  { %v1873_v30 = vpop.eup %1872  ;;  %1878 = vrcp.f32 %v1050_v28 }
 0xec3   :  { %v936_v31 = vpop.permute.xlu0 %935  ;;  %v931_v33 = vmul.f32 %v1873_v30, %v1865_v18  ;;  %v1828_v18 = vld [vmem:[#allocation2 + $0x70] sm:$0xff]  }
 0xec4   :  { %v1875_v32 = vpop.eup %1874  ;;  %1718 = vmatpush3.bf16.msra.mxu1 %v936_v31  ;;  %v1550_v31 = vld [vmem:[#allocation5 + $0x5d] ss:$0 sm:$0xff] }
 0xec5   :  { %v933_v34 = vmul.f32 %v1875_v32, %v1867_v19  ;;  %1729 = vmatprep.subr.bf16.mxu1 %v1971_v10  ;;  %v1057_v36 = vpop.permute.xlu1 %1056 }
 0xec7   :  { %v934_v35 = vpack.c.bf16 %v933_v34, %v931_v33 }
 0xec9   :  { %1720 = vmatmul.mubr.msk.bf16.vlgmr.msra.gmra.mrb[20].mxu1 %vm237_vm5, %v934_v35 }
 0xeca   :  { %v1877_v39 = vpop.eup %1876  ;;  %1730 = vmatpush3.bf16.msra.mxu1 %v1057_v36  ;;  %1731 = vmatprep.mubr.msk.bf16.mxu1 %vm1972_vm3, %v1971_v10  ;;  %v1830_v36 = vld [vmem:[#allocation2 + $0x80] sm:$0xff]  }
 0xecb   :  { %1743 = vmatprep.subr.bf16.mxu1 %v1971_v10  ;;  %v1052_v41 = vmul.f32 %v1877_v39, %v1869_v20  ;;  %v1831_v39 = vld [vmem:[#allocation2 + $0x88] sm:$0xff]  }
 0xecc   :  { %v1879_v40 = vpop.eup %1878 }
 0xecd   :  { %v1054_v42 = vmul.f32 %v1879_v40, %v1871_v22  ;;  %v1832_v40 = vld [vmem:[#allocation2 + $0x90] sm:$0xff]  }
 0xecf   :  { %v1055_v43 = vpack.c.bf16 %v1054_v42, %v1052_v41  ;;  %v1833_v41 = vld [vmem:[#allocation2 + $0x98] sm:$0xff]   ;;  %v1551_v42 = vld [vmem:[#allocation5 + $0x5a] ss:$0 sm:$0xff] }
 0xed1   :  { %1732 = vmatmul.mubr.msk.bf16.vlgmr.msra.gmra.mrb[24].mxu1 %vm237_vm5, %v1055_v43 }
 0xed2   :  { %1747 = vmatprep.mubr.msk.bf16.mxu1 %vm1972_vm3, %v1971_v10  ;;  %1744 = vmatpush3.bf16.msra.mxu1 %v1828_v18  ;;  %v1835_v18 = vld [vmem:[#allocation2 + $0xa8] sm:$0xff]  }
 0xed3   :  { %1745 = vmatprep.subr.bf16.mxu1 %v1971_v10 }
 0xf9c   :  { %v975_v45 = vpop.f32.mrb[20].mxu1 }
 0xf9d   :  { %v1721_v46 = vpop.f32.mrb[21].mxu1 }
 0xf9e   :  { %v978_v48 = vpop.f32.mrb[22].mxu1 }
 0xf9f   :  { %v1722_v49 = vpop.f32.mrb[23].mxu1 }
 0xfa4   :  { %v1096_v51 = vpop.f32.mrb[24].mxu1 }
 0xfa5   :  { %v1733_v53 = vpop.f32.mrb[25].mxu1 }
 0xfa6   :  { %v1099_v54 = vpop.f32.mrb[26].mxu1 }
 0xfa7   :  { %v1809_v55 = vpack.i.bf16 %v1099_v54, %v1096_v51  ;;  %v1734_v56 = vpop.f32.mrb[27].mxu1 }
 0xfa9   :  { %1810 = vrot.lane.b32.xlu1 %v1809_v55, %s1978_s18 }
0x101b   :  { %v1811_v57 = vpop.permute.xlu1 %1810 }
0x101c   :  { %v1813_v58 = vunpack.i.h.bf16 %v1811_v57  ;;  %v1812_v59 = vunpack.i.l.bf16 %v1811_v57 }
0x101e   :  { %v1112_v60 = vsel %vm237_vm5, %v978_v48, %v1813_v58  ;;  %v1111_v61 = vsel %vm237_vm5, %v975_v45, %v1812_v59 }
0x101f   :  { %v1113_v62 = vpack.c.bf16 %v1112_v60, %v1111_v61 }
0x1021   :  { %1740 = vmatmul.mubr.msk.bf16.vlgmr.msra.gmra.mrb[28].mxu0 %vm188_vm4, %v1113_v62  ;;  %v1555_v62 = vld [vmem:[#allocation5 + $0x5b] ss:$0 sm:$0xff] }
0x1022   :  { %1759 = vmatprep.mubr.msk.bf16.mxu0 %vm1972_vm3, %v1971_v10  ;;  %1752 = vmatpush3.bf16.msra.mxu0 %v1830_v36 }
0x1023   :  { %1753 = vmatprep.subr.bf16.mxu0 %v1971_v10 }
0x1026   :  { %1754 = vmatpush3.bf16.msra.mxu0 %v1831_v39 }
0x1027   :  { %1755 = vmatprep.subr.bf16.mxu0 %v1971_v10 }
0x102a   :  { %1756 = vmatpush3.bf16.msra.mxu0 %v1832_v40 }
0x102b   :  { %1757 = vmatprep.subr.bf16.mxu0 %v1971_v10 }
0x102e   :  { %1758 = vmatpush3.bf16.msra.mxu0 %v1833_v41 }
0x10f4   :  { %v1172_v0 = vpop.f32.mrb[28].mxu0 }
0x10f5   :  { %v1173_v1 = vadd.f32 %v1545_v63, %v1172_v0  ;;  %v1741_v2 = vpop.f32.mrb[29].mxu0 }
0x10f6   :  { %v1175_v3 = vpop.f32.mrb[30].mxu0 }
0x10f7   :  { %v1176_v4 = vadd.f32 %v1545_v63, %v1175_v3  ;;  %v1742_v5 = vpop.f32.mrb[31].mxu0  ;;  %v1179_v6 = vadd.f32 %v1173_v1, %v2142_v37 }
0x10f9   :  { %v1183_v7 = vsel %vm188_vm4, %v1179_v6, 0.0  ;;  %v1180_v8 = vadd.f32 %v1176_v4, %v2144_v38  ;;  %v1829_v38 = vld [vmem:[#allocation2 + $0x78] sm:$0xff]  }
0x10fa   :  { %1184 = vadd.xlane.f32.xlu0 %v1183_v7  ;;  %1746 = vmatpush3.bf16.msra.mxu1 %v1829_v38 }
0x10fb   :  { %v1186_v9 = vsel %vm188_vm4, %v1180_v8, 0.0  ;;  %1763 = vmatprep.subr.bf16.mxu1 %v1971_v10 }
0x10fc   :  { %1187 = vadd.xlane.f32.xlu1 %v1186_v9 }
0x1187   :  { %v1185_v11 = vpop.xlane.xlu0 %1184 }
0x1188   :  { %v1189_v12 = vmul.f32 0.03125, %v1185_v11 }
0x1189   :  { %v1188_v13 = vpop.xlane.xlu1 %1187 }
0x118a   :  { %v1191_v50 = vsub.f32 %v1179_v6, %v1189_v12  ;;  %v1190_v14 = vmul.f32 0.03125, %v1188_v13 }
0x118c   :  { %v1192_v15 = vsub.f32 %v1180_v8, %v1190_v14  ;;  %v1193_v16 = vmul.f32 %v1191_v50, %v1191_v50 }
0x118e   :  { %v1195_v52 = vsel %vm188_vm4, %v1193_v16, 0.0  ;;  %v1194_v17 = vmul.f32 %v1192_v15, %v1192_v15 }
0x118f   :  { %1196 = vadd.xlane.f32.xlu0 %v1195_v52 }
0x1190   :  { %v1198_v37 = vsel %vm188_vm4, %v1194_v17, 0.0 }
0x1193   :  { %1199 = vadd.xlane.f32.xlu0 %v1198_v37  ;;  %v1834_v37 = vld [vmem:[#allocation2 + $0xa0] sm:$0xff]  }
0x121c   :  { %v1197_v29 = vpop.xlane.xlu0 %1196 }
0x121d   :  { %v1201_v19 = vmul.f32 0.03125, %v1197_v29 }
0x121f   :  { %v1203_v27 = vadd.f32 1e-05, %v1201_v19 }
0x1220   :  { %v1200_v20 = vpop.xlane.xlu0 %1199 }
0x1221   :  { %1880 = vrsqrt.f32 %v1203_v27  ;;  %v1202_v21 = vmul.f32 0.03125, %v1200_v20 }
0x1223   :  { %v1204_v22 = vadd.f32 1e-05, %v1202_v21 }
0x1225   :  { %1882 = vrsqrt.f32 %v1204_v22 }
0x122b   :  { %v1881_v23 = vpop.eup %1880 }
0x122c   :  { %v1207_v24 = vmul.f32 %v1881_v23, %v1191_v50  ;;  %v1561_v23 = vld [vmem:[#allocation5 + $0x5e] ss:$0 sm:$0xff] }
0x122e   :  { %v1213_v28 = vmul.f32 %v1549_v25, %v1207_v24 }
0x122f   :  { %v1883_v26 = vpop.eup %1882 }
0x1230   :  { %v1208_v30 = vmul.f32 %v1883_v26, %v1192_v15  ;;  %v1219_v33 = vadd.f32 %v1550_v31, %v1213_v28 }
0x1232   :  { %v1214_v32 = vmul.f32 %v1549_v25, %v1208_v30  ;;  %v1562_v30 = vld [vmem:[#allocation5 + $0x5f] ss:$0 sm:$0xff] }
0x1234   :  { %v1220_v34 = vadd.f32 %v1550_v31, %v1214_v32 }
0x1236   :  { %v1221_v35 = vpack.c.bf16 %v1220_v34, %v1219_v33 }
0x1238   :  { %1748 = vmatmul.mubr.msk.bf16.vlgmr.msra.gmra.mrb[28].mxu1 %vm188_vm4, %v1221_v35 }
0x1239   :  { %1767 = vmatprep.mubr.msk.bf16.mxu1 %vm1972_vm3, %v1971_v10  ;;  %1764 = vmatpush3.bf16.msra.mxu1 %v1834_v37 }
0x123a   :  { %1765 = vmatprep.subr.bf16.mxu1 %v1971_v10 }
0x123d   :  { %1766 = vmatpush3.bf16.msra.mxu1 %v1835_v18 }
0x130b   :  { %v1280_v43 = vpop.f32.mrb[28].mxu1 }
0x130c   :  { %v1281_v44 = vadd.f32 %v1551_v42, %v1280_v43  ;;  %v1749_v45 = vpop.f32.mrb[29].mxu1 }
0x130d   :  { %v1283_v46 = vpop.f32.mrb[30].mxu1 }
0x130e   :  { %v1289_v47 = vmul.f32 0.70710677, %v1281_v44  ;;  %v1284_v48 = vadd.f32 %v1551_v42, %v1283_v46  ;;  %v1750_v49 = vpop.f32.mrb[31].mxu1  ;;  %v1287_v56 = vmul.f32 0.5, %v1281_v44 }
0x1310   :  { %1884 = verf.f32 %v1289_v47  ;;  %v1290_v51 = vmul.f32 0.70710677, %v1284_v48  ;;  %v1288_v57 = vmul.f32 0.5, %v1284_v48 }
0x1312   :  { %1886 = verf.f32 %v1290_v51 }
0x131a   :  { %v1885_v53 = vpop.eup %1884 }
0x131b   :  { %v1293_v54 = vadd.f32 1.0, %v1885_v53 }
0x131c   :  { %v1887_v55 = vpop.eup %1886 }
0x131d   :  { %v1294_v58 = vadd.f32 1.0, %v1887_v55  ;;  %v1295_v59 = vmul.f32 %v1293_v54, %v1287_v56 }
0x131f   :  { %v1296_v60 = vmul.f32 %v1294_v58, %v1288_v57 }
0x1321   :  { %v1297_v61 = vpack.c.bf16 %v1296_v60, %v1295_v59 }
0x1323   :  { %1760 = vmatmul.mubr.msk.bf16.vlgmr.msra.gmra.mrb[32].mxu0 %vm70_vm0, %v1297_v61 }
0x13f6   :  { %v1372_v63 = vpop.f32.mrb[32].mxu0 }
0x13f7   :  { %v1373_v0 = vadd.f32 %v1555_v62, %v1372_v63  ;;  %v1761_v1 = vpop.f32.mrb[33].mxu0 }
0x13f8   :  { %v1375_v2 = vpop.f32.mrb[34].mxu0 }
0x13f9   :  { %v1376_v3 = vadd.f32 %v1555_v62, %v1375_v2  ;;  %v1762_v4 = vpop.f32.mrb[35].mxu0  ;;  %v1379_v5 = vadd.f32 %v1373_v0, %v1219_v33 }
0x13fb   :  { %v1383_v6 = vsel %vm188_vm4, %v1379_v5, 0.0  ;;  %v1380_v7 = vadd.f32 %v1376_v3, %v1220_v34  ;;  %v1563_v34 = vld [vmem:[#allocation5 + $0x60] ss:$0 sm:$0xff] }
0x13fc   :  { %1384 = vadd.xlane.f32.xlu1 %v1383_v6 }
0x13fd   :  { %v1386_v8 = vsel %vm188_vm4, %v1380_v7, 0.0 }
0x13fe   :  { %1387 = vadd.xlane.f32.xlu0 %v1386_v8 }
0x1489   :  { %v1385_v9 = vpop.xlane.xlu1 %1384 }
0x148a   :  { %v1389_v11 = vmul.f32 0.03125, %v1385_v9 }
0x148b   :  { %v1388_v12 = vpop.xlane.xlu0 %1387 }
0x148c   :  { %v1391_v13 = vsub.f32 %v1379_v5, %v1389_v11  ;;  %v1390_v50 = vmul.f32 0.03125, %v1388_v12 }
0x148e   :  { %v1392_v14 = vsub.f32 %v1380_v7, %v1390_v50  ;;  %v1393_v15 = vmul.f32 %v1391_v13, %v1391_v13 }
0x1490   :  { %v1395_v16 = vsel %vm188_vm4, %v1393_v15, 0.0  ;;  %v1394_v52 = vmul.f32 %v1392_v14, %v1392_v14 }
0x1491   :  { %1396 = vadd.xlane.f32.xlu1 %v1395_v16 }
0x1492   :  { %v1398_v17 = vsel %vm188_vm4, %v1394_v52, 0.0 }
0x1493   :  { %1399 = vadd.xlane.f32.xlu0 %v1398_v17 }
0x151e   :  { %v1397_v38 = vpop.xlane.xlu1 %1396 }
0x151f   :  { %v1401_v29 = vmul.f32 0.03125, %v1397_v38 }
0x1520   :  { %v1400_v19 = vpop.xlane.xlu0 %1399 }
0x1521   :  { %v1403_v27 = vadd.f32 1e-05, %v1401_v29  ;;  %v1402_v20 = vmul.f32 0.03125, %v1400_v19 }
0x1523   :  { %1888 = vrsqrt.f32 %v1403_v27  ;;  %v1404_v21 = vadd.f32 1e-05, %v1402_v20 }
0x1525   :  { %1890 = vrsqrt.f32 %v1404_v21 }
0x152d   :  { %v1889_v22 = vpop.eup %1888 }
0x152e   :  { %v1407_v24 = vmul.f32 %v1889_v22, %v1391_v13 }
0x152f   :  { %v1891_v25 = vpop.eup %1890 }
0x1530   :  { %v1413_v26 = vmul.f32 %v1561_v23, %v1407_v24  ;;  %v1408_v28 = vmul.f32 %v1891_v25, %v1392_v14 }
0x1532   :  { %v1414_v31 = vmul.f32 %v1561_v23, %v1408_v28  ;;  %v1419_v32 = vadd.f32 %v1562_v30, %v1413_v26 }
0x1534   :  { %v1420_v33 = vadd.f32 %v1562_v30, %v1414_v31 }
0x1536   :  { %v1421_v10 = vpack.c.bf16 %v1420_v33, %v1419_v32 }
0x1538   :  { %1768 = vmatmul.mubr.msk.bf16.vlgmr.msra.gmra.mrb[32].mxu1 %vm188_vm4, %v1421_v10 }
0x160b   :  { %v1480_v35 = vpop.f32.mrb[32].mxu1 }
0x160c   :  { %v1481_v36 = vadd.f32 %v1563_v34, %v1480_v35  ;;  %v1769_v39 = vpop.f32.mrb[33].mxu1 }
0x160d   :  { %v1483_v40 = vpop.f32.mrb[34].mxu1 }
0x160e   :  { %1487 = vst [vmem:[#allocation7] sm:$0xff] %v1481_v36  ;;  %v1484_v41 = vadd.f32 %v1563_v34, %v1483_v40  ;;  %v1770_v42 = vpop.f32.mrb[35].mxu1 }
0x1610   :  { %1488 = vst [vmem:[#allocation7 + $0x8] sm:$0xff] %v1484_v41 }
0x1611   :  { %1947 = shalt.err (!%p1944_p6)
}
0x1612   :  { %s1948_s24 = scalar_lea.hbm %s2241_s3, 256 }
0x1613   :  { %p1949_p7 = scmp.ne.s32.totalorder %s2241_s3, %s1948_s24  ;;  %p1952_p8 = scmp.lt.u32.totalorder %s1948_s24, %s2241_s3 }
0x1615   :  { %p1954_p9 = pnand %p1952_p8, %p1949_p7 }
0x1617   :  { %1957 = shalt.err (!%p1954_p9)
}
0x1618   :  { %1500 = dma.vmem_to_hbm [thread:$0]  %s1495_s20, 256, %s2241_s3, [#allocation4], %s1968_s1, %s1968_s1, %s1969_s9  }
0x1619   :  { %1962 = dma.done.wait [#allocation4], 256  }
0x161a   :  { %1963 = vsyncadd [#allocation4], 4294967040 }
0x161b   :  { %1504 = vsyncpa [#allocation3], 1 }
0x161c   :  { %1505 = vsyncpa [#allocation6], 1 }
0x161d   :  { %1506 = vsyncpa [#allocation4], 1 }

</bundles_post_ra>
